<compile_context>
chip_gen: v6e
topology: v6e:2x2x1
jax: 0.10.0
libtpu: 0.0.40
codegen_flags: <defaults>
</compile_context>

<pallas_src>
import functools

import jax
import jax.numpy as jnp
from jax import lax
from jax.experimental import pallas as pl
from jax.experimental.pallas import tpu as pltpu


# ------------------------------- helpers ------------------------------------

def _round_up(x, m):
    return (x + m - 1) // m * m


def _i32(x):
    """Python int -> same 32-bit pattern, representable as int32."""
    x &= 0xFFFFFFFF
    return x - (1 << 32) if x >= (1 << 31) else x


def _lsr(x, shift):
    """Logical right shift on int32 (arithmetic shift, then mask sign bits)."""
    return jnp.bitwise_and(jnp.right_shift(x, shift), (1 << (32 - shift)) - 1)


def _uniform_hash(seed, shape, row_off, col_off):
    """Deterministic per-(row, col, seed) uniforms in [0, 1).

    Pure int32 ops (wrapping mul/add, xor, shifts) so it lowers in Mosaic and
    is bit-identical in plain JAX: any tiling reproduces the same mask via
    row_off/col_off, and the reference reproduces the kernel's dropout exactly
    without any HBM-resident uniform arrays.
    """
    r = lax.broadcasted_iota(jnp.int32, shape, 0) + row_off
    c = lax.broadcasted_iota(jnp.int32, shape, 1) + col_off
    x = r * _i32(0x9E3779B1) + c * _i32(0x85EBCA77) + seed * _i32(0xC2B2AE3D)
    x = x ^ _lsr(x, 16)
    x = x * _i32(0x7FEB352D)
    x = x ^ _lsr(x, 15)
    x = x * _i32(0x846CA68B)
    x = x ^ _lsr(x, 16)
    return _lsr(x, 9).astype(jnp.float32) * (1.0 / (1 << 23))


def _vmem_limit_bytes():
    """Generation-aware scoped-VMEM limit (v5e/v6e 128 MiB, v7x 64 MiB)."""
    try:
        cap = int(pltpu.get_tpu_info().vmem_capacity_bytes)
    except Exception:
        cap = 64 * 1024 * 1024      # conservative default (v7x-sized)
    return max(16 << 20, min(int(0.75 * cap), 112 << 20))


# ---------------- fused whole-chain kernel (column-tiled over d) -------------

def _make_fused_kernel(num_levels, rate, use_dropout, td):
    scale = 1.0 / (1.0 - rate) if use_dropout else 1.0

    def kernel(seeds_ref, feat_ref, *rest):
        q_refs = rest[:num_levels]
        out_refs = rest[num_levels:]
        col_off = pl.program_id(0) * td
        f = feat_ref[...].astype(jnp.float32)
        for k in range(num_levels):
            if use_dropout:
                u = _uniform_hash(seeds_ref[k], f.shape, 0, col_off)
                f = jnp.where(u >= rate, f * scale, 0.0)
            nxt = jnp.dot(q_refs[k][...], f.astype(jnp.bfloat16),
                          preferred_element_type=jnp.float32)
            out_refs[k][...] = nxt.astype(out_refs[k].dtype)
            f = nxt

    return kernel


def _tree_levels_fused(feat_pad, qs, seeds, rate, use_dropout, td, vmem_limit):
    num_levels = len(qs)
    n0p, d_pad = feat_pad.shape
    out_shapes = tuple(jax.ShapeDtypeStruct((q.shape[0], d_pad), jnp.float32)
                       for q in qs)
    kernel = _make_fused_kernel(num_levels, float(rate), use_dropout, td)

    feat_spec = pl.BlockSpec((n0p, td), lambda j, s: (0, j))
    q_specs = [pl.BlockSpec(q.shape, lambda j, s: (0, 0)) for q in qs]   # resident
    out_specs = [pl.BlockSpec((q.shape[0], td), lambda j, s: (0, j)) for q in qs]

    outs = pl.pallas_call(
        kernel,
        out_shape=out_shapes,
        grid_spec=pltpu.PrefetchScalarGridSpec(
            num_scalar_prefetch=1,
            grid=(d_pad // td,),
            in_specs=[feat_spec] + q_specs,
            out_specs=out_specs),
        compiler_params=pltpu.CompilerParams(
            dimension_semantics=("parallel",),
            vmem_limit_bytes=vmem_limit),
    )(seeds, feat_pad, *qs)
    if not isinstance(outs, (list, tuple)):
        outs = (outs,)
    return list(outs)


# ------------- per-level kernel A: feat fully resident in VMEM ---------------

def _spmm_fres_kernel(seed_ref, q_ref, f_ref, o_ref, *, rate, use_dropout):
    f = f_ref[...].astype(jnp.float32)
    if use_dropout:
        u = _uniform_hash(seed_ref[0], f.shape, 0, 0)
        f = jnp.where(u >= rate, f * (1.0 / (1.0 - rate)), 0.0)
    o_ref[...] = jnp.dot(q_ref[...], f.astype(jnp.bfloat16),
                         preferred_element_type=jnp.float32).astype(o_ref.dtype)


def _spmm_level_fres(q, f, seed, rate, use_dropout, tm, vmem_limit):
    n1p, n0p = q.shape
    d_pad = f.shape[1]
    kernel = functools.partial(_spmm_fres_kernel, rate=float(rate),
                               use_dropout=use_dropout)
    return pl.pallas_call(
        kernel,
        out_shape=jax.ShapeDtypeStruct((n1p, d_pad), jnp.float32),
        grid_spec=pltpu.PrefetchScalarGridSpec(
            num_scalar_prefetch=1,
            grid=(n1p // tm,),
            in_specs=[pl.BlockSpec((tm, n0p), lambda i, s: (i, 0)),
                      pl.BlockSpec((n0p, d_pad), lambda i, s: (0, 0))],  # f once
            out_specs=pl.BlockSpec((tm, d_pad), lambda i, s: (i, 0))),
        compiler_params=pltpu.CompilerParams(
            dimension_semantics=("parallel",),
            vmem_limit_bytes=vmem_limit),
    )(seed, q, f)


# ------------- per-level kernel B: K-reduction with f32 accumulator ----------

def _spmm_reduction_kernel(seed_ref, q_ref, f_ref, o_ref, acc_ref, *,
                           rate, use_dropout, tk):
    @pl.when(pl.program_id(1) == 0)
    def _():
        acc_ref[...] = jnp.zeros_like(acc_ref)

    f = f_ref[...].astype(jnp.float32)
    if use_dropout:
        row_off = pl.program_id(1) * tk          # mask independent of row-tile i
        u = _uniform_hash(seed_ref[0], f.shape, row_off, 0)
        f = jnp.where(u >= rate, f * (1.0 / (1.0 - rate)), 0.0)
    acc_ref[...] += jnp.dot(q_ref[...], f.astype(jnp.bfloat16),
                            preferred_element_type=jnp.float32)

    @pl.when(pl.program_id(1) == pl.num_programs(1) - 1)
    def _():
        o_ref[...] = acc_ref[...].astype(o_ref.dtype)


def _spmm_level_reduction(q, f, seed, rate, use_dropout, tm, tk, vmem_limit):
    n1p, n0p = q.shape
    d_pad = f.shape[1]
    kernel = functools.partial(_spmm_reduction_kernel, rate=float(rate),
                               use_dropout=use_dropout, tk=tk)
    return pl.pallas_call(
        kernel,
        out_shape=jax.ShapeDtypeStruct((n1p, d_pad), jnp.float32),
        grid_spec=pltpu.PrefetchScalarGridSpec(
            num_scalar_prefetch=1,
            grid=(n1p // tm, n0p // tk),
            in_specs=[pl.BlockSpec((tm, tk), lambda i, k, s: (i, k)),
                      pl.BlockSpec((tk, d_pad), lambda i, k, s: (k, 0))],
            out_specs=pl.BlockSpec((tm, d_pad), lambda i, k, s: (i, 0)),
            scratch_shapes=[pltpu.VMEM((tm, d_pad), jnp.float32)]),
        compiler_params=pltpu.CompilerParams(
            dimension_semantics=("parallel", "arbitrary"),
            vmem_limit_bytes=vmem_limit),
    )(seed, q, f)


# ----------------------------- planning helpers ------------------------------

def _fused_td(n0p, qs_rem, d_pad, vmem_limit):
    budget = int(0.8 * vmem_limit)
    q_bytes = 2 * sum(int(q.shape[0]) * int(q.shape[1]) * 2 for q in qs_rem)
    out_rows = sum(int(q.shape[0]) for q in qs_rem)
    for td in (512, 256, 128):
        if d_pad % td:
            continue
        est = q_bytes + 2 * n0p * td * 4 + 2 * out_rows * td * 4 + (2 << 20)
        if est <= budget:
            return td
    return None


def _fres_tm(q, n0p, d_pad, vmem_limit):
    budget = int(0.8 * vmem_limit)
    n1p, qk = int(q.shape[0]), int(q.shape[1])
    f_bytes = 2 * n0p * d_pad * 4
    for tm in (512, 256, 128):
        if n1p % tm:
            continue
        est = f_bytes + 2 * tm * qk * 2 + 2 * tm * d_pad * 4 + (2 << 20)
        if est <= budget:
            return tm
    return None


def _reduction_plan(q, d_pad, vmem_limit, force_tk=None):
    budget = int(0.8 * vmem_limit)
    n1p, n0p = int(q.shape[0]), int(q.shape[1])
    tm = 256 if n1p % 256 == 0 else 128
    cands = (force_tk,) if force_tk else (512, 256, 128)
    tk = 128
    for t in cands:
        if t is None or n0p % t:
            continue
        est = (2 * tm * t * 2 + 2 * t * d_pad * 4 + 2 * tm * d_pad * 4
               + tm * d_pad * 4 + (2 << 20))
        if est <= budget:
            tk = t
            break
    return tm, tk


# ------------------------------ Tree_Encoder ---------------------------------

def _prepare_inputs(feat, tree_partitions, dropout, training, rng_key):
    """Shared preprocessing for the Pallas path AND the pure-JAX reference."""
    num_levels = len(tree_partitions) - 1
    d = feat.shape[1]
    d_pad = _round_up(d, 128)
    use_dropout = bool(training) and float(dropout) > 0.0

    # true level sizes n_0 .. n_{num_levels}
    n = [tree_partitions[0].shape[0]] + [tree_partitions[k].shape[1]
                                         for k in range(num_levels)]

    # Q_k = P_k^T in bf16 (MXU-native, half the HBM traffic of f32).
    qs = [jnp.transpose(tree_partitions[k]).astype(jnp.bfloat16)
          for k in range(num_levels)]

    # Last level: fold the torch.randperm row shuffle of feat into Q's columns
    # (P^T @ feat[idx] == P^T[:, argsort(idx)] @ feat) and stack [Q; Q_shuf]
    # -> one MXU pass over feat produces both outputs.
    k_perm, k_seed = jax.random.split(rng_key)
    idx = jax.random.permutation(k_perm, n[num_levels - 1])
    q_shuf = jnp.take(qs[-1], jnp.argsort(idx), axis=1)
    qs[-1] = jnp.concatenate([qs[-1], q_shuf], axis=0)

    # Zero-pad everything to 128-multiples: lane-dense stores, (8,128)-aligned
    # blocks, exact for the matmul.
    def pad2(x, r, c):
        return jnp.pad(x, ((0, r - x.shape[0]), (0, c - x.shape[1])))

    n_pad = [_round_up(v, 128) for v in n]
    for k in range(num_levels):
        qs[k] = pad2(qs[k], _round_up(qs[k].shape[0], 128), n_pad[k])
    feat_pad = pad2(feat.astype(jnp.float32), n_pad[0], d_pad)

    # Per-level int32 seeds for the in-kernel dropout hash.
    seeds = jax.random.randint(k_seed, (num_levels,), 0, 2 ** 31 - 1,
                               dtype=jnp.int32)

    n_out_true = [n[k + 1] for k in range(num_levels)]
    return feat_pad, qs, seeds, d, d_pad, n_out_true, use_dropout


def _assemble(tree_embed, outs, d, n_out_true):
    num_levels = len(outs)
    for k in range(num_levels - 1):
        tree_embed.append(outs[k][:n_out_true[k], :d])
    n_last = n_out_true[-1]
    slab = outs[-1]
    tree_embed.append(slab[:n_last, :d])                 # feat at last level
    tree_embed.append(slab[n_last:2 * n_last, :d])       # shuf_feat
    return tree_embed


def tree_encoder_forward(feat, tree_partitions, *, dropout, big, training,
                         rng_key, force_per_level=False, force_reduction=False,
                         force_tk=None):
    """Mirrors Tree_Encoder.forward. Returns the list tree_embed."""
    tree_embed = [] if big else [feat]
    num_levels = len(tree_partitions) - 1
    if num_levels <= 0:
        return tree_embed

    feat_pad, qs, seeds, d, d_pad, n_out_true, use_dropout = _prepare_inputs(
        feat, tree_partitions, dropout, training, rng_key)
    rate = float(dropout)
    vmem_limit = _vmem_limit_bytes()

    outs = []
    f = feat_pad
    k = 0
    while k < num_levels:
        if not force_per_level:
            # Hybrid chaining: as soon as the remaining chain fits VMEM, run it
            # fused (no HBM round trips for intermediates, no extra launches).
            td = _fused_td(f.shape[0], qs[k:], d_pad, vmem_limit)
            if td is not None:
                outs.extend(_tree_levels_fused(f, qs[k:], seeds[k:], rate,
                                               use_dropout, td, vmem_limit))
                break
        seed = seeds[k:k + 1]
        tm = None if force_reduction else _fres_tm(qs[k], f.shape[0], d_pad,
                                                   vmem_limit)
        if tm is None:
            tmr, tk = _reduction_plan(qs[k], d_pad, vmem_limit, force_tk)
            f = _spmm_level_reduction(qs[k], f, seed, rate, use_dropout,
                                      tmr, tk, vmem_limit)
        else:
            f = _spmm_level_fres(qs[k], f, seed, rate, use_dropout, tm,
                                 vmem_limit)
        outs.append(f)
        k += 1

    return _assemble(tree_embed, outs, d, n_out_true)


def tree_encoder_reference(feat, tree_partitions, *, dropout, big, training,
                           rng_key):
    """Pure-JAX reference with identical preprocessing / RNG / dtypes."""
    tree_embed = [] if big else [feat]
    num_levels = len(tree_partitions) - 1
    if num_levels <= 0:
        return tree_embed
    feat_pad, qs, seeds, d, d_pad, n_out_true, use_dropout = _prepare_inputs(
        feat, tree_partitions, dropout, training, rng_key)
    rate = float(dropout)
    scale = 1.0 / (1.0 - rate) if use_dropout else 1.0
    f = feat_pad.astype(jnp.float32)
    outs = []
    for k in range(num_levels):
        if use_dropout:
            u = _uniform_hash(seeds[k], f.shape, 0, 0)
            f = jnp.where(u >= rate, f * scale, 0.0)
        f = jnp.dot(qs[k], f.astype(jnp.bfloat16),
                    preferred_element_type=jnp.float32)
        outs.append(f)
    return _assemble(tree_embed, outs, d, n_out_true)


# ---------------------------------- main -------------------------------------

if __name__ == "__main__":
    root = jax.random.PRNGKey(0)
    k_feat, k_p0, k_p1, k_p2, k_fwd = jax.random.split(root, 5)

    # ---- test 1: small tree -> fused column-tiled whole-chain kernel --------
    hidden = 32
    sizes = [64, 32, 16, 8]
    feat = jax.random.normal(k_feat, (sizes[0], hidden), dtype=jnp.float32)
    parts = [
        jax.random.normal(k_p0, (sizes[0], sizes[1]), jnp.float32) * 0.1,
        jax.random.normal(k_p1, (sizes[1], sizes[2]), jnp.float32) * 0.1,
        jax.random.normal(k_p2, (sizes[2], sizes[3]), jnp.float32) * 0.1,
    ]
    embed = tree_encoder_forward(feat, parts, dropout=0.5, big=False,
                                 training=True, rng_key=k_fwd)
    ref = tree_encoder_reference(feat, parts, dropout=0.5, big=False,
                                 training=True, rng_key=k_fwd)
    for t in embed:
        jax.block_until_ready(t)
    assert len(embed) == 4
    assert embed[0].shape == (64, 32)
    assert embed[1].shape == (32, 32)
    assert embed[2].shape == (16, 32)
    assert embed[3].shape == (16, 32)
    for got, want in zip(embed, ref):
        assert got.shape == want.shape
        assert jnp.allclose(got, want, rtol=5e-2, atol=5e-2), "fused mismatch"

    # ---- test 2: per-level f-resident tiled kernels (big=True) --------------
    k2_feat, k2_p0, k2_p1, k2_p2, k2_fwd = jax.random.split(
        jax.random.PRNGKey(1), 5)
    hidden2 = 128
    sizes2 = [512, 128, 64, 32]
    feat2 = jax.random.normal(k2_feat, (sizes2[0], hidden2), jnp.float32)
    parts2 = [
        jax.random.normal(k2_p0, (sizes2[0], sizes2[1]), jnp.float32) * 0.05,
        jax.random.normal(k2_p1, (sizes2[1], sizes2[2]), jnp.float32) * 0.05,
        jax.random.normal(k2_p2, (sizes2[2], sizes2[3]), jnp.float32) * 0.05,
    ]
    embed2 = tree_encoder_forward(feat2, parts2, dropout=0.3, big=True,
                                  training=True, rng_key=k2_fwd,
                                  force_per_level=True)
    ref2 = tree_encoder_reference(feat2, parts2, dropout=0.3, big=True,
                                  training=True, rng_key=k2_fwd)
    for t in embed2:
        jax.block_until_ready(t)
    assert len(embed2) == 3
    assert embed2[0].shape == (128, 128)
    assert embed2[1].shape == (64, 128)
    assert embed2[2].shape == (64, 128)
    for got, want in zip(embed2, ref2):
        assert got.shape == want.shape
        assert jnp.allclose(got, want, rtol=5e-2, atol=5e-2), "f-res mismatch"

    # ---- test 3: forced K-reduction kernel (multi-step accumulation) --------
    embed3 = tree_encoder_forward(feat2, parts2, dropout=0.3, big=True,
                                  training=True, rng_key=k2_fwd,
                                  force_per_level=True, force_reduction=True,
                                  force_tk=128)
    for t in embed3:
        jax.block_until_ready(t)
    for got, want in zip(embed3, ref2):
        assert got.shape == want.shape
        assert jnp.allclose(got, want, rtol=5e-2, atol=5e-2), "reduction mismatch"

    # ---- test 4: eval mode (dropout disabled) --------------------------------
    embed4 = tree_encoder_forward(feat, parts, dropout=0.5, big=False,
                                  training=False, rng_key=k_fwd)
    ref4 = tree_encoder_reference(feat, parts, dropout=0.5, big=False,
                                  training=False, rng_key=k_fwd)
    for t in embed4:
        jax.block_until_ready(t)
    for got, want in zip(embed4, ref4):
        assert jnp.allclose(got, want, rtol=5e-2, atol=5e-2), "eval mismatch"

    print("KERNEL_OK")
</pallas_src>

<mosaic_0001>
module attributes {stable_mosaic.version = 11 : i64} {
  func.func @kernel(%arg0: i32, %arg1: memref<2xi32, #tpu.memory_space<smem>>, %arg2: memref<128x128xf32, #tpu.memory_space<vmem>>, %arg3: memref<128x128xbf16, #tpu.memory_space<vmem>>, %arg4: memref<128x128xbf16, #tpu.memory_space<vmem>>, %arg5: memref<128x128xf32, #tpu.memory_space<vmem>>, %arg6: memref<128x128xf32, #tpu.memory_space<vmem>>) attributes {dimension_semantics = [#tpu.dimension_semantics<parallel>], iteration_bounds = array<i64: 1>, scalar_prefetch = 1 : i64, scratch_operands = 0 : i64, tpu.core_type = #tpu.core_type<tc>, window_params = [{transform_indices = @transform_0, window_bounds = array<i64: 128, 128>}, {pipeline_mode = #tpu.pipeline_mode<synchronous>, transform_indices = @transform_1, window_bounds = array<i64: 128, 128>}, {pipeline_mode = #tpu.pipeline_mode<synchronous>, transform_indices = @transform_2, window_bounds = array<i64: 128, 128>}, {transform_indices = @transform_3, window_bounds = array<i64: 128, 128>}, {transform_indices = @transform_4, window_bounds = array<i64: 128, 128>}]} {
    %c128_i32 = arith.constant 128 : i32
    %0 = arith.muli %arg0, %c128_i32 : i32
    %c0 = arith.constant 0 : index
    %c0_0 = arith.constant 0 : index
    %1 = vector.load %arg2[%c0, %c0_0] : memref<128x128xf32, #tpu.memory_space<vmem>>, vector<128x128xf32>
    %c0_1 = arith.constant 0 : index
    %2 = memref.load %arg1[%c0_1] : memref<2xi32, #tpu.memory_space<smem>>
    %3 = tpu.iota {dimensions = array<i32: 0>} : vector<128x128xi32>
    %c0_i32 = arith.constant 0 : i32
    %4 = vector.broadcast %c0_i32 : i32 to vector<128x128xi32>
    %5 = arith.addi %3, %4 : vector<128x128xi32>
    %6 = tpu.iota {dimensions = array<i32: 1>} : vector<128x128xi32>
    %7 = vector.broadcast %0 : i32 to vector<128x128xi32>
    %8 = arith.addi %6, %7 : vector<128x128xi32>
    %c-1640531535_i32 = arith.constant -1640531535 : i32
    %9 = vector.broadcast %c-1640531535_i32 : i32 to vector<128x128xi32>
    %10 = arith.muli %5, %9 : vector<128x128xi32>
    %c-2048144777_i32 = arith.constant -2048144777 : i32
    %11 = vector.broadcast %c-2048144777_i32 : i32 to vector<128x128xi32>
    %12 = arith.muli %8, %11 : vector<128x128xi32>
    %13 = arith.addi %10, %12 : vector<128x128xi32>
    %c-1028477379_i32 = arith.constant -1028477379 : i32
    %14 = arith.muli %2, %c-1028477379_i32 : i32
    %15 = vector.broadcast %14 : i32 to vector<128x128xi32>
    %16 = arith.addi %13, %15 : vector<128x128xi32>
    %c16_i32 = arith.constant 16 : i32
    %17 = vector.broadcast %c16_i32 : i32 to vector<128x128xi32>
    %18 = arith.shrsi %16, %17 : vector<128x128xi32>
    %c65535_i32 = arith.constant 65535 : i32
    %19 = vector.broadcast %c65535_i32 : i32 to vector<128x128xi32>
    %20 = arith.andi %18, %19 : vector<128x128xi32>
    %21 = arith.xori %16, %20 : vector<128x128xi32>
    %c2146121005_i32 = arith.constant 2146121005 : i32
    %22 = vector.broadcast %c2146121005_i32 : i32 to vector<128x128xi32>
    %23 = arith.muli %21, %22 : vector<128x128xi32>
    %c15_i32 = arith.constant 15 : i32
    %24 = vector.broadcast %c15_i32 : i32 to vector<128x128xi32>
    %25 = arith.shrsi %23, %24 : vector<128x128xi32>
    %c131071_i32 = arith.constant 131071 : i32
    %26 = vector.broadcast %c131071_i32 : i32 to vector<128x128xi32>
    %27 = arith.andi %25, %26 : vector<128x128xi32>
    %28 = arith.xori %23, %27 : vector<128x128xi32>
    %c-2073254261_i32 = arith.constant -2073254261 : i32
    %29 = vector.broadcast %c-2073254261_i32 : i32 to vector<128x128xi32>
    %30 = arith.muli %28, %29 : vector<128x128xi32>
    %c16_i32_2 = arith.constant 16 : i32
    %31 = vector.broadcast %c16_i32_2 : i32 to vector<128x128xi32>
    %32 = arith.shrsi %30, %31 : vector<128x128xi32>
    %c65535_i32_3 = arith.constant 65535 : i32
    %33 = vector.broadcast %c65535_i32_3 : i32 to vector<128x128xi32>
    %34 = arith.andi %32, %33 : vector<128x128xi32>
    %35 = arith.xori %30, %34 : vector<128x128xi32>
    %c9_i32 = arith.constant 9 : i32
    %36 = vector.broadcast %c9_i32 : i32 to vector<128x128xi32>
    %37 = arith.shrsi %35, %36 : vector<128x128xi32>
    %c8388607_i32 = arith.constant 8388607 : i32
    %38 = vector.broadcast %c8388607_i32 : i32 to vector<128x128xi32>
    %39 = arith.andi %37, %38 : vector<128x128xi32>
    %40 = arith.sitofp %39 : vector<128x128xi32> to vector<128x128xf32>
    %cst = arith.constant 1.1920929E-7 : f32
    %41 = vector.broadcast %cst : f32 to vector<128x128xf32>
    %42 = arith.mulf %40, %41 : vector<128x128xf32>
    %cst_4 = arith.constant 5.000000e-01 : f32
    %43 = vector.broadcast %cst_4 : f32 to vector<128x128xf32>
    %44 = arith.cmpf oge, %42, %43 : vector<128x128xf32>
    %cst_5 = arith.constant 2.000000e+00 : f32
    %45 = vector.broadcast %cst_5 : f32 to vector<128x128xf32>
    %46 = arith.mulf %1, %45 : vector<128x128xf32>
    %cst_6 = arith.constant 0.000000e+00 : f32
    %47 = vector.broadcast %cst_6 : f32 to vector<128x128xf32>
    %48 = arith.select %44, %46, %47 : vector<128x128xi1>, vector<128x128xf32>
    %c0_7 = arith.constant 0 : index
    %c0_8 = arith.constant 0 : index
    %49 = vector.load %arg3[%c0_7, %c0_8] : memref<128x128xbf16, #tpu.memory_space<vmem>>, vector<128x128xbf16>
    %50 = arith.truncf %48 : vector<128x128xf32> to vector<128x128xbf16>
    %cst_9 = arith.constant dense<0.000000e+00> : vector<128x128xf32>
    %51 = tpu.matmul %49, %50, %cst_9 {dimension_numbers = #tpu.dot_dimension_numbers<[1], [0], [0], [1], [0, 0, 1, 1], [], []>} : vector<128x128xbf16>, vector<128x128xbf16>, vector<128x128xf32> -> vector<128x128xf32>
    %c0_10 = arith.constant 0 : index
    %c0_11 = arith.constant 0 : index
    %52 = vector.load %arg5[%c0_10, %c0_11] : memref<128x128xf32, #tpu.memory_space<vmem>>, vector<128x128xf32>
    tpu.vector_store %arg5[%c0_10, %c0_11], %51 {strides = array<i32>} : memref<128x128xf32, #tpu.memory_space<vmem>>, vector<128x128xf32>,
    %c1 = arith.constant 1 : index
    %53 = memref.load %arg1[%c1] : memref<2xi32, #tpu.memory_space<smem>>
    %54 = tpu.iota {dimensions = array<i32: 0>} : vector<128x128xi32>
    %c0_i32_12 = arith.constant 0 : i32
    %55 = vector.broadcast %c0_i32_12 : i32 to vector<128x128xi32>
    %56 = arith.addi %54, %55 : vector<128x128xi32>
    %57 = tpu.iota {dimensions = array<i32: 1>} : vector<128x128xi32>
    %58 = vector.broadcast %0 : i32 to vector<128x128xi32>
    %59 = arith.addi %57, %58 : vector<128x128xi32>
    %c-1640531535_i32_13 = arith.constant -1640531535 : i32
    %60 = vector.broadcast %c-1640531535_i32_13 : i32 to vector<128x128xi32>
    %61 = arith.muli %56, %60 : vector<128x128xi32>
    %c-2048144777_i32_14 = arith.constant -2048144777 : i32
    %62 = vector.broadcast %c-2048144777_i32_14 : i32 to vector<128x128xi32>
    %63 = arith.muli %59, %62 : vector<128x128xi32>
    %64 = arith.addi %61, %63 : vector<128x128xi32>
    %c-1028477379_i32_15 = arith.constant -1028477379 : i32
    %65 = arith.muli %53, %c-1028477379_i32_15 : i32
    %66 = vector.broadcast %65 : i32 to vector<128x128xi32>
    %67 = arith.addi %64, %66 : vector<128x128xi32>
    %c16_i32_16 = arith.constant 16 : i32
    %68 = vector.broadcast %c16_i32_16 : i32 to vector<128x128xi32>
    %69 = arith.shrsi %67, %68 : vector<128x128xi32>
    %c65535_i32_17 = arith.constant 65535 : i32
    %70 = vector.broadcast %c65535_i32_17 : i32 to vector<128x128xi32>
    %71 = arith.andi %69, %70 : vector<128x128xi32>
    %72 = arith.xori %67, %71 : vector<128x128xi32>
    %c2146121005_i32_18 = arith.constant 2146121005 : i32
    %73 = vector.broadcast %c2146121005_i32_18 : i32 to vector<128x128xi32>
    %74 = arith.muli %72, %73 : vector<128x128xi32>
    %c15_i32_19 = arith.constant 15 : i32
    %75 = vector.broadcast %c15_i32_19 : i32 to vector<128x128xi32>
    %76 = arith.shrsi %74, %75 : vector<128x128xi32>
    %c131071_i32_20 = arith.constant 131071 : i32
    %77 = vector.broadcast %c131071_i32_20 : i32 to vector<128x128xi32>
    %78 = arith.andi %76, %77 : vector<128x128xi32>
    %79 = arith.xori %74, %78 : vector<128x128xi32>
    %c-2073254261_i32_21 = arith.constant -2073254261 : i32
    %80 = vector.broadcast %c-2073254261_i32_21 : i32 to vector<128x128xi32>
    %81 = arith.muli %79, %80 : vector<128x128xi32>
    %c16_i32_22 = arith.constant 16 : i32
    %82 = vector.broadcast %c16_i32_22 : i32 to vector<128x128xi32>
    %83 = arith.shrsi %81, %82 : vector<128x128xi32>
    %c65535_i32_23 = arith.constant 65535 : i32
    %84 = vector.broadcast %c65535_i32_23 : i32 to vector<128x128xi32>
    %85 = arith.andi %83, %84 : vector<128x128xi32>
    %86 = arith.xori %81, %85 : vector<128x128xi32>
    %c9_i32_24 = arith.constant 9 : i32
    %87 = vector.broadcast %c9_i32_24 : i32 to vector<128x128xi32>
    %88 = arith.shrsi %86, %87 : vector<128x128xi32>
    %c8388607_i32_25 = arith.constant 8388607 : i32
    %89 = vector.broadcast %c8388607_i32_25 : i32 to vector<128x128xi32>
    %90 = arith.andi %88, %89 : vector<128x128xi32>
    %91 = arith.sitofp %90 : vector<128x128xi32> to vector<128x128xf32>
    %cst_26 = arith.constant 1.1920929E-7 : f32
    %92 = vector.broadcast %cst_26 : f32 to vector<128x128xf32>
    %93 = arith.mulf %91, %92 : vector<128x128xf32>
    %cst_27 = arith.constant 5.000000e-01 : f32
    %94 = vector.broadcast %cst_27 : f32 to vector<128x128xf32>
    %95 = arith.cmpf oge, %93, %94 : vector<128x128xf32>
    %cst_28 = arith.constant 2.000000e+00 : f32
    %96 = vector.broadcast %cst_28 : f32 to vector<128x128xf32>
    %97 = arith.mulf %51, %96 : vector<128x128xf32>
    %cst_29 = arith.constant 0.000000e+00 : f32
    %98 = vector.broadcast %cst_29 : f32 to vector<128x128xf32>
    %99 = arith.select %95, %97, %98 : vector<128x128xi1>, vector<128x128xf32>
    %c0_30 = arith.constant 0 : index
    %c0_31 = arith.constant 0 : index
    %100 = vector.load %arg4[%c0_30, %c0_31] : memref<128x128xbf16, #tpu.memory_space<vmem>>, vector<128x128xbf16>
    %101 = arith.truncf %99 : vector<128x128xf32> to vector<128x128xbf16>
    %cst_32 = arith.constant dense<0.000000e+00> : vector<128x128xf32>
    %102 = tpu.matmul %100, %101, %cst_32 {dimension_numbers = #tpu.dot_dimension_numbers<[1], [0], [0], [1], [0, 0, 1, 1], [], []>} : vector<128x128xbf16>, vector<128x128xbf16>, vector<128x128xf32> -> vector<128x128xf32>
    %c0_33 = arith.constant 0 : index
    %c0_34 = arith.constant 0 : index
    %103 = vector.load %arg6[%c0_33, %c0_34] : memref<128x128xf32, #tpu.memory_space<vmem>>, vector<128x128xf32>
    tpu.vector_store %arg6[%c0_33, %c0_34], %102 {strides = array<i32>} : memref<128x128xf32, #tpu.memory_space<vmem>>, vector<128x128xf32>,
    return
  }
  func.func @transform_0(%arg0: i32, %arg1: memref<2xi32, #tpu.memory_space<smem>>) -> (i32, i32) {
    %c0_i32 = arith.constant 0 : i32
    %c0_i32_0 = arith.constant 0 : i32
    return %c0_i32, %arg0 : i32, i32
  }
  func.func @transform_1(%arg0: i32, %arg1: memref<2xi32, #tpu.memory_space<smem>>) -> (i32, i32) {
    %c0_i32 = arith.constant 0 : i32
    %c0_i32_0 = arith.constant 0 : i32
    %c0_i32_1 = arith.constant 0 : i32
    return %c0_i32, %c0_i32_0 : i32, i32
  }
  func.func @transform_2(%arg0: i32, %arg1: memref<2xi32, #tpu.memory_space<smem>>) -> (i32, i32) {
    %c0_i32 = arith.constant 0 : i32
    %c0_i32_0 = arith.constant 0 : i32
    %c0_i32_1 = arith.constant 0 : i32
    return %c0_i32, %c0_i32_0 : i32, i32
  }
  func.func @transform_3(%arg0: i32, %arg1: memref<2xi32, #tpu.memory_space<smem>>) -> (i32, i32) {
    %c0_i32 = arith.constant 0 : i32
    %c0_i32_0 = arith.constant 0 : i32
    return %c0_i32, %arg0 : i32, i32
  }
  func.func @transform_4(%arg0: i32, %arg1: memref<2xi32, #tpu.memory_space<smem>>) -> (i32, i32) {
    %c0_i32 = arith.constant 0 : i32
    %c0_i32_0 = arith.constant 0 : i32
    return %c0_i32, %arg0 : i32, i32
  }
}

</mosaic_0001>

<bundles_post_ra>
// kernel: tpu_custom_call.1
= control target key start
LH: loop header
LB: loop body
LE: loop exit
PB: predicated region body
PF: predicated region fallthrough
CT: control target
= control target key end

     0   :  { %s1587_s18 = smov [#allocation3]   ;;  %s1931_s0 = inlined_call_operand.hbm [shape: s32[2], index: 0, kind: input, shape index: {}]   ;;  %s1932_s1 = inlined_call_operand.hbm [shape: f32[128,128], index: 1, kind: input, shape index: {}]   ;;  %s1933_s2 = inlined_call_operand.hbm [shape: bf16[128,128], index: 2, kind: input, shape index: {}]   ;;  %s1934_s3 = inlined_call_operand.hbm [shape: bf16[128,128], index: 3, kind: input, shape index: {}]   ;;  %s1935_s4 = inlined_call_operand.hbm [shape: f32[128,128], index: 4, kind: output, shape index: {0}]   ;;  %s1936_s5 = inlined_call_operand.hbm [shape: f32[128,128], index: 5, kind: output, shape index: {1}]  }
   0x1   :  { %12 = dma.hbm_to_smem %s1931_s0, 16, %s1587_s18, [#allocation2] }
   0x2   :  { %1577 = dma.done.wait [#allocation2], 16 }
   0x3   :  { %1578 = vsyncadd [#allocation2], 4294967280 }
   0x4   :  { %14 = sfence }
   0x5   :  { %15 = vsyncpa [#allocation5], 0 }
   0x6   :  { %16 = vsyncpa [#allocation8], 0 }
   0x7   :  { %17 = vsyncpa [#allocation6], 0 }
   0x8   :  { %18 = vsyncpa [#allocation12], 0  ;;  %s1588_s21 = smov [#allocation7]  }
   0x9   :  { %s36_s22 = sshll.u32 %s1588_s21, 4  ;;  %s37_s22 = int_to_ptr.vmem [resolvable:$true] %s36_s22 }
   0xa   :  { %s1485_s23 = scalar_lea.vmem %s37_s22, 1024  ;;  %p1490_p1 = scmp.lt.s32.totalorder %s37_s22, %s37_s22 }
   0xb   :  { %p1486_p0 = scmp.ne.s32.totalorder %s37_s22, %s1485_s23  ;;  %p1491_p2 = scmp.lt.s32.totalorder %s1485_s23, %s1485_s23 }
   0xd   :  { %p1492_p3 = por %p1491_p2, %p1490_p1 }
   0xf   :  { %p1493_p4 = pnand %p1492_p3, %p1486_p0 }
  0x11   :  { %1496 = shalt.err (!%p1493_p4)
}
  0x12   :  { %s1589_s24 = smov 64   ;;  %s1590_s25 = smov 4  }
  0x13   :  { %42 = dma.hbm_to_vmem [thread:$0]  %s1933_s2, 1024, %s37_s22, [#allocation8], %s1589_s24, %s1589_s24, %s1590_s25  }
  0x14   :  { %s1591_s27 = smov [#allocation4]  }
  0x15   :  { %s24_s28 = sshll.u32 %s1591_s27, 4  ;;  %s25_s28 = int_to_ptr.vmem [resolvable:$true] %s24_s28 }
  0x16   :  { %s1505_s29 = scalar_lea.vmem %s25_s28, 2048  ;;  %p1510_p6 = scmp.lt.s32.totalorder %s25_s28, %s25_s28 }
  0x17   :  { %p1506_p5 = scmp.ne.s32.totalorder %s25_s28, %s1505_s29  ;;  %p1511_p7 = scmp.lt.s32.totalorder %s1505_s29, %s1505_s29 }
  0x19   :  { %p1512_p8 = por %p1511_p7, %p1510_p6 }
  0x1b   :  { %p1513_p9 = pnand %p1512_p8, %p1506_p5 }
  0x1d   :  { %1516 = shalt.err (!%p1513_p9)
}
  0x1e   :  { %s1592_s30 = smov 128   ;;  %s1593_s6 = smov 8  }
  0x1f   :  { %30 = dma.hbm_to_vmem [thread:$0]  %s1932_s1, 2048, %s25_s28, [#allocation5], %s1592_s30, %s1592_s30, %s1593_s6  }
  0x20   :  { %s1594_s2 = smov [#allocation9]  }
  0x21   :  { %s48_s9 = sshll.u32 %s1594_s2, 4  ;;  %s49_s9 = int_to_ptr.vmem [resolvable:$true] %s48_s9 }
  0x22   :  { %s1525_s10 = scalar_lea.vmem %s49_s9, 1024  ;;  %p1530_p11 = scmp.lt.s32.totalorder %s49_s9, %s49_s9 }
  0x23   :  { %p1526_p10 = scmp.ne.s32.totalorder %s49_s9, %s1525_s10  ;;  %p1531_p12 = scmp.lt.s32.totalorder %s1525_s10, %s1525_s10 }
  0x25   :  { %p1532_p13 = por %p1531_p12, %p1530_p11 }
  0x27   :  { %p1533_p0 = pnand %p1532_p13, %p1526_p10 }
  0x29   :  { %1536 = shalt.err (!%p1533_p0)
}
  0x2a   :  { %54 = dma.hbm_to_vmem [thread:$0]  %s1934_s3, 1024, %s49_s9, [#allocation8], %s1589_s24, %s1589_s24, %s1590_s25  }
  0x2b   :  { %1579 = dma.done.wait [#allocation5], 2048  }
  0x2c   :  { %1580 = vsyncadd [#allocation5], 4294965248 }
  0x2d   :  { %1581 = dma.done.wait [#allocation8], 2048  }
  0x2e   :  { %1582 = vsyncadd [#allocation8], 4294965248  ;;  %v83_v0 = vlaneseq  ;;  %s82_s1 = sld [smem:[#allocation3]]  ;;  %v80_v15 = vld [vmem:[#allocation4 + $0x70] sm:$0xff]  ;;  %v81_v16 = vld [vmem:[#allocation4 + $0x78] sm:$0xff]  ;;  %s1595_s15 = smov [#allocation10]  }
  0x2f   :  { %v78_v17 = vld [vmem:[#allocation4 + $0x60] sm:$0xff]  ;;  %v425_v21 = vmul.f32 2.0, %v80_v15  ;;  %v426_v22 = vmul.f32 2.0, %v81_v16  ;;  %v79_v24 = vld [vmem:[#allocation4 + $0x68] sm:$0xff]  ;;  %v76_v27 = vld [vmem:[#allocation4 + $0x50] sm:$0xff]  ;;  %s1250_s13 = sld [smem:[#allocation3 + $0x1]] }
  0x30   :  { %v1642_v1 = vshrl.u32 %v83_v0, 7  ;;  %v101_v2 = vand.u32 127, %v83_v0  ;;  %v423_v31 = vmul.f32 2.0, %v78_v17  ;;  %v77_v34 = vld [vmem:[#allocation4 + $0x58] sm:$0xff]  ;;  %v424_v39 = vmul.f32 2.0, %v79_v24  ;;  %v1453_v49 = vld [vmem:[#allocation7] sm:$0xff]  }
  0x31   :  { %v1672_v30 = vpack.c.bf16 %v426_v22, %v425_v21  ;;  %v1680_v40 = vmul.f32 2.0, %v76_v27  ;;  %v1692_v47 = vmul.f32 2.0, %v77_v34  ;;  %1395 = vmatprep.mubr.bf16.mxu0 %v1453_v49  ;;  %s1125_s16 = sshll.u32 %s1595_s15, 4  ;;  %s1126_s16 = int_to_ptr.vmem [resolvable:$true] %s1125_s16 }
  0x32   :  { %v98_v3 = vadd.s32 112, %v1642_v1  ;;  %v99_v4 = vadd.s32 120, %v1642_v1  ;;  %v1646_v5 = vmul.u32 2246822519, %v101_v2  ;;  %v96_v6 = vadd.s32 96, %v1642_v1  ;;  %s1537_s17 = scalar_lea.vmem %s1126_s16, 2048  ;;  %p1542_p2 = scmp.lt.s32.totalorder %s1126_s16, %s1126_s16 }
  0x33   :  { %v97_v7 = vadd.s32 104, %v1642_v1  ;;  %v94_v8 = vadd.s32 80, %v1642_v1  ;;  %v95_v9 = vadd.s32 88, %v1642_v1  ;;  %v92_v10 = vadd.s32 64, %v1642_v1  ;;  %p1538_p1 = scmp.ne.s32.totalorder %s1126_s16, %s1537_s17  ;;  %p1543_p3 = scmp.lt.s32.totalorder %s1537_s17, %s1537_s17 }
  0x34   :  { %v118_v11 = vmul.u32 2654435761, %v98_v3  ;;  %v119_v12 = vmul.u32 2654435761, %v99_v4  ;;  %v93_v13 = vadd.s32 72, %v1642_v1  ;;  %v1655_v14 = vadd.s32 48, %v1642_v1 }
  0x35   :  { %s137_s3 = smul.u32 3266489917, %s82_s1  ;;  %v1658_v18 = vadd.s32 56, %v1642_v1  ;;  %v116_v25 = vmul.u32 2654435761, %v96_v6  ;;  %v1698_v56 = vpack.c.bf16 %v424_v39, %v423_v31  ;;  %p1544_p4 = por %p1543_p3, %p1542_p2 }
  0x36   :  { %v1661_v19 = vadd.s32 %v1646_v5, %v118_v11  ;;  %v1664_v20 = vadd.s32 %v1646_v5, %v119_v12  ;;  %v117_v26 = vmul.u32 2654435761, %v97_v7  ;;  %v114_v35 = vmul.u32 2654435761, %v94_v8  ;;  %s629_s14 = smul.u32 3266489917, %s1250_s13 }
  0x37   :  { %v1666_v23 = vstv %s137_s3  ;;  %v1675_v32 = vadd.s32 %v1646_v5, %v116_v25  ;;  %v115_v36 = vmul.u32 2654435761, %v95_v9  ;;  %v112_v48 = vmul.u32 2654435761, %v92_v10  ;;  %p1545_p5 = pnand %p1544_p4, %p1538_p1 }
  0x38   :  { %v153_v28 = vadd.s32 %v1666_v23, %v1661_v19  ;;  %v154_v29 = vadd.s32 %v1666_v23, %v1664_v20  ;;  %v1678_v33 = vadd.s32 %v1646_v5, %v117_v26  ;;  %v1687_v43 = vadd.s32 %v1646_v5, %v114_v35 }
  0x39   :  { %v151_v41 = vadd.s32 %v1666_v23, %v1675_v32  ;;  %v1690_v44 = vadd.s32 %v1646_v5, %v115_v36  ;;  %v1701_v57 = vadd.s32 %v1646_v5, %v112_v48  ;;  %v113_v0 = vmul.u32 2654435761, %v93_v13 }
  0x3a   :  { %v1168_v37 = vshrl.u32 %v153_v28, 16  ;;  %v1169_v38 = vshrl.u32 %v154_v29, 16  ;;  %v152_v42 = vadd.s32 %v1666_v23, %v1678_v33  ;;  %v149_v52 = vadd.s32 %v1666_v23, %v1687_v43 }
  0x3b   :  { %v1166_v50 = vshrl.u32 %v151_v41, 16  ;;  %v150_v53 = vadd.s32 %v1666_v23, %v1690_v44  ;;  %v147_v2 = vadd.s32 %v1666_v23, %v1701_v57  ;;  %v1706_v10 = vadd.s32 %v1646_v5, %v113_v0 }
  0x3c   :  { %v201_v45 = vxor.u32 %v1168_v37, %v153_v28  ;;  %v202_v46 = vxor.u32 %v1169_v38, %v154_v29  ;;  %v1167_v51 = vshrl.u32 %v152_v42, 16  ;;  %v1164_v60 = vshrl.u32 %v149_v52, 16 }
  0x3d   :  { %v199_v58 = vxor.u32 %v1166_v50, %v151_v41  ;;  %v1165_v61 = vshrl.u32 %v150_v53, 16  ;;  %v1162_v11 = vshrl.u32 %v147_v2, 16  ;;  %v148_v13 = vadd.s32 %v1666_v23, %v1706_v10 }
  0x3e   :  { %v217_v54 = vmul.u32 2146121005, %v201_v45  ;;  %v218_v55 = vmul.u32 2146121005, %v202_v46  ;;  %v200_v59 = vxor.u32 %v1167_v51, %v152_v42  ;;  %v197_v6 = vxor.u32 %v1164_v60, %v149_v52 }
  0x3f   :  { %v215_v3 = vmul.u32 2146121005, %v199_v58  ;;  %v198_v7 = vxor.u32 %v1165_v61, %v150_v53  ;;  %v195_v24 = vxor.u32 %v1162_v11, %v147_v2  ;;  %v1163_v34 = vshrl.u32 %v148_v13, 16 }
  0x40   :  { %v1184_v62 = vshrl.u32 %v217_v54, 15  ;;  %v1185_v63 = vshrl.u32 %v218_v55, 15  ;;  %v216_v4 = vmul.u32 2146121005, %v200_v59  ;;  %v213_v16 = vmul.u32 2146121005, %v197_v6 }
  0x41   :  { %v1182_v12 = vshrl.u32 %v215_v3, 15  ;;  %v214_v17 = vmul.u32 2146121005, %v198_v7  ;;  %v211_v35 = vmul.u32 2146121005, %v195_v24  ;;  %v196_v45 = vxor.u32 %v1163_v34, %v148_v13 }
  0x42   :  { %v265_v8 = vxor.u32 %v1184_v62, %v217_v54  ;;  %v266_v9 = vxor.u32 %v1185_v63, %v218_v55  ;;  %v1183_v15 = vshrl.u32 %v216_v4, 15  ;;  %v1180_v27 = vshrl.u32 %v213_v16, 15 }
  0x43   :  { %v263_v25 = vxor.u32 %v1182_v12, %v215_v3  ;;  %v1181_v28 = vshrl.u32 %v214_v17, 15  ;;  %v1178_v46 = vshrl.u32 %v211_v35, 15  ;;  %v212_v54 = vmul.u32 2146121005, %v196_v45  ;;  %v75_v12 = vld [vmem:[#allocation4 + $0x48] sm:$0xff] }
  0x44   :  { %v281_v21 = vmul.u32 2221713035, %v265_v8  ;;  %v282_v22 = vmul.u32 2221713035, %v266_v9  ;;  %v264_v26 = vxor.u32 %v1183_v15, %v216_v4  ;;  %v261_v38 = vxor.u32 %v1180_v27, %v213_v16  ;;  %v74_v8 = vld [vmem:[#allocation4 + $0x40] sm:$0xff] }
  0x45   :  { %v279_v36 = vmul.u32 2221713035, %v263_v25  ;;  %v262_v39 = vxor.u32 %v1181_v28, %v214_v17  ;;  %v259_v55 = vxor.u32 %v1178_v46, %v211_v35  ;;  %v1179_v0 = vshrl.u32 %v212_v54, 15  ;;  %v72_v46 = vld [vmem:[#allocation4 + $0x30] sm:$0xff] }
  0x46   :  { %v1200_v29 = vshrl.u32 %v281_v21, 16  ;;  %v1201_v31 = vshrl.u32 %v282_v22, 16  ;;  %v280_v37 = vmul.u32 2221713035, %v264_v26  ;;  %v277_v50 = vmul.u32 2221713035, %v261_v38 }
  0x47   :  { %v1198_v48 = vshrl.u32 %v279_v36, 16  ;;  %v278_v51 = vmul.u32 2221713035, %v262_v39  ;;  %v275_v2 = vmul.u32 2221713035, %v259_v55  ;;  %v260_v15 = vxor.u32 %v1179_v0, %v212_v54 }
  0x48   :  { %v329_v41 = vxor.u32 %v1200_v29, %v281_v21  ;;  %v330_v42 = vxor.u32 %v1201_v31, %v282_v22  ;;  %v1199_v49 = vshrl.u32 %v280_v37, 16  ;;  %v1196_v60 = vshrl.u32 %v277_v50, 16 }
  0x49   :  { %v327_v58 = vxor.u32 %v1198_v48, %v279_v36  ;;  %v1197_v61 = vshrl.u32 %v278_v51, 16  ;;  %v1194_v16 = vshrl.u32 %v275_v2, 16  ;;  %v276_v24 = vmul.u32 2221713035, %v260_v15  ;;  %v73_v48 = vld [vmem:[#allocation4 + $0x38] sm:$0xff] }
  0x4a   :  { %v1216_v52 = vshrl.u32 %v329_v41, 9  ;;  %v1217_v53 = vshrl.u32 %v330_v42, 9  ;;  %v328_v59 = vxor.u32 %v1199_v49, %v280_v37  ;;  %v325_v6 = vxor.u32 %v1196_v60, %v277_v50 }
  0x4b   :  { %v1214_v3 = vshrl.u32 %v327_v58, 9  ;;  %v326_v7 = vxor.u32 %v1197_v61, %v278_v51  ;;  %v323_v25 = vxor.u32 %v1194_v16, %v275_v2  ;;  %v1195_v31 = vshrl.u32 %v276_v24, 16 }
  0x4c   :  { %v377_v62 = vcvt.s32.f32 %v1216_v52  ;;  %v378_v63 = vcvt.s32.f32 %v1217_v53  ;;  %v1215_v4 = vshrl.u32 %v328_v59, 9  ;;  %v1212_v22 = vshrl.u32 %v325_v6, 9 }
  0x4d   :  { %v375_v17 = vcvt.s32.f32 %v1214_v3  ;;  %v1213_v13 = vshrl.u32 %v326_v7, 9  ;;  %v1210_v34 = vshrl.u32 %v323_v25, 9  ;;  %v419_v35 = vmul.f32 2.0, %v74_v8 }
  0x4e   :  { %v393_v9 = vmul.f32 1.1920929e-07, %v377_v62  ;;  %v394_v11 = vmul.f32 1.1920929e-07, %v378_v63  ;;  %v376_v21 = vcvt.s32.f32 %v1215_v4  ;;  %v373_v28 = vcvt.s32.f32 %v1212_v22  ;;  %v70_v63 = vld [vmem:[#allocation4 + $0x20] sm:$0xff] }
  0x4f   :  { %v391_v26 = vmul.f32 1.1920929e-07, %v375_v17  ;;  %v374_v29 = vcvt.s32.f32 %v1213_v13  ;;  %v420_v36 = vmul.f32 2.0, %v75_v12  ;;  %v1233_v39 = vpack.c.bf16 %v1692_v47, %v1680_v40  ;;  %v71_v12 = vld [vmem:[#allocation4 + $0x28] sm:$0xff] }
  0x50   :  { %vm409_vm0 = vcmp.ge.f32.partialorder %v393_v9, 0.5  ;;  %vm410_vm1 = vcmp.ge.f32.partialorder %v394_v11, 0.5  ;;  %v392_v27 = vmul.f32 1.1920929e-07, %v376_v21  ;;  %v389_v37 = vmul.f32 1.1920929e-07, %v373_v28 }
  0x51   :  { %vm1226_vm2 = vmpackc.low %vm410_vm1, %vm409_vm0  ;;  %vm407_vm3 = vcmp.ge.f32.partialorder %v391_v26, 0.5  ;;  %v390_v38 = vmul.f32 1.1920929e-07, %v374_v29  ;;  %v324_v41 = vxor.u32 %v1195_v31, %v276_v24  ;;  %v371_v42 = vcvt.s32.f32 %v1210_v34 }
  0x52   :  { %1379 = vmatprep.subr.msk.bf16.mxu0 %vm1226_vm2, %v1672_v30  ;;  %vm408_vm4 = vcmp.ge.f32.partialorder %v392_v27, 0.5  ;;  %v110_v45 = vmul.u32 2654435761, %v1655_v14  ;;  %vm405_vm6 = vcmp.ge.f32.partialorder %v389_v37, 0.5  ;;  %v1236_v14 = vpack.c.bf16 %v420_v36, %v419_v35 }
  0x53   :  { %1380 = vmatpush3.bf16.msk.msra.mxu0 %vm1226_vm2, %v1672_v30  ;;  %vm1229_vm5 = vmpackc.low %vm408_vm4, %vm407_vm3  ;;  %vm406_vm7 = vcmp.ge.f32.partialorder %v390_v38, 0.5  ;;  %v111_v30 = vmul.u32 2654435761, %v1658_v18  ;;  %v1211_v50 = vshrl.u32 %v324_v41, 9  ;;  %v387_v51 = vmul.f32 1.1920929e-07, %v371_v42 }
  0x54   :  { %1381 = vmatprep.subr.msk.bf16.mxu0 %vm1229_vm5, %v1698_v56  ;;  %vm1717_vm8 = vmpackc.low %vm406_vm7, %vm405_vm6  ;;  %v1722_v40 = vadd.s32 %v1646_v5, %v110_v45  ;;  %v88_v52 = vadd.s32 32, %v1642_v1  ;;  %v89_v53 = vadd.s32 40, %v1642_v1  ;;  %v417_v55 = vmul.f32 2.0, %v72_v46 }
  0x55   :  { %v1726_v47 = vadd.s32 %v1646_v5, %v111_v30  ;;  %v372_v18 = vcvt.s32.f32 %v1211_v50  ;;  %v418_v58 = vmul.f32 2.0, %v73_v48  ;;  %vm403_vm9 = vcmp.ge.f32.partialorder %v387_v51, 0.5 }
  0x56   :  { %v145_v54 = vadd.s32 %v1666_v23, %v1722_v40  ;;  %v108_v59 = vmul.u32 2654435761, %v88_v52  ;;  %v109_v60 = vmul.u32 2654435761, %v89_v53  ;;  %v86_v0 = vadd.s32 16, %v1642_v1 }
  0x57   :  { %1382 = vmatpush3.bf16.msk.msra.mxu0 %vm1229_vm5, %v1698_v56  ;;  %v146_v56 = vadd.s32 %v1666_v23, %v1726_v47  ;;  %v388_v61 = vmul.f32 1.1920929e-07, %v372_v18  ;;  %v87_v2 = vadd.s32 24, %v1642_v1  ;;  %v1751_v17 = vmul.f32 2.0, %v70_v63 }
  0x58   :  { %1383 = vmatprep.subr.msk.bf16.mxu0 %vm1717_vm8, %v1233_v39  ;;  %v1160_v62 = vshrl.u32 %v145_v54, 16  ;;  %v1741_v4 = vadd.s32 %v1646_v5, %v108_v59  ;;  %v1744_v6 = vadd.s32 %v1646_v5, %v109_v60  ;;  %v106_v8 = vmul.u32 2654435761, %v86_v0 }
  0x59   :  { %v1161_v3 = vshrl.u32 %v146_v56, 16  ;;  %vm404_vm10 = vcmp.ge.f32.partialorder %v388_v61, 0.5  ;;  %v107_v9 = vmul.u32 2654435761, %v87_v2  ;;  %v1753_v22 = vpack.c.bf16 %v418_v58, %v417_v55 }
  0x5a   :  { %v193_v7 = vxor.u32 %v1160_v62, %v145_v54  ;;  %vm1235_vm11 = vmpackc.low %vm404_vm10, %vm403_vm9  ;;  %v143_v15 = vadd.s32 %v1666_v23, %v1741_v4  ;;  %v144_v16 = vadd.s32 %v1666_v23, %v1744_v6  ;;  %v1756_v13 = vadd.s32 %v1646_v5, %v106_v8 }
  0x5b   :  { %1384 = vmatpush3.bf16.msk.msra.mxu0 %vm1717_vm8, %v1233_v39  ;;  %v194_v11 = vxor.u32 %v1161_v3, %v146_v56  ;;  %v1759_v24 = vadd.s32 %v1646_v5, %v107_v9  ;;  %v85_v28 = vadd.s32 8, %v1642_v1  ;;  %v1762_v31 = vmul.f32 2.0, %v71_v12  ;;  %v68_v12 = vld [vmem:[#allocation4 + $0x10] sm:$0xff] }
  0x5c   :  { %1385 = vmatprep.subr.msk.bf16.mxu0 %vm1235_vm11, %v1236_v14  ;;  %v209_v21 = vmul.u32 2146121005, %v193_v7  ;;  %v1158_v26 = vshrl.u32 %v143_v15, 16  ;;  %v1159_v27 = vshrl.u32 %v144_v16, 16  ;;  %v141_v34 = vadd.s32 %v1666_v23, %v1756_v13 }
  0x5d   :  { %v210_v25 = vmul.u32 2146121005, %v194_v11  ;;  %v142_v35 = vadd.s32 %v1666_v23, %v1759_v24  ;;  %v104_v39 = vmul.u32 2654435761, %v1642_v1 }
  0x5e   :  { %v1176_v29 = vshrl.u32 %v209_v21, 15  ;;  %v191_v37 = vxor.u32 %v1158_v26, %v143_v15  ;;  %v192_v38 = vxor.u32 %v1159_v27, %v144_v16  ;;  %v1156_v42 = vshrl.u32 %v141_v34, 16 }
  0x5f   :  { %1386 = vmatpush3.bf16.msk.msra.mxu0 %vm1235_vm11, %v1236_v14  ;;  %v1177_v36 = vshrl.u32 %v210_v25, 15  ;;  %v1157_v45 = vshrl.u32 %v142_v35, 16  ;;  %v105_v46 = vmul.u32 2654435761, %v85_v28  ;;  %v1770_v50 = vadd.s32 %v1646_v5, %v104_v39 }
  0x60   :  { %v257_v41 = vxor.u32 %v1176_v29, %v209_v21  ;;  %v207_v30 = vmul.u32 2146121005, %v191_v37  ;;  %v208_v49 = vmul.u32 2146121005, %v192_v38  ;;  %v189_v14 = vxor.u32 %v1156_v42, %v141_v34 }
  0x61   :  { %v258_v48 = vxor.u32 %v1177_v36, %v210_v25  ;;  %v190_v52 = vxor.u32 %v1157_v45, %v142_v35  ;;  %v1773_v53 = vadd.s32 %v1646_v5, %v105_v46  ;;  %v139_v1 = vadd.s32 %v1666_v23, %v1770_v50 }
  0x62   :  { %v273_v51 = vmul.u32 2221713035, %v257_v41  ;;  %v1174_v54 = vshrl.u32 %v207_v30, 15  ;;  %v1175_v55 = vshrl.u32 %v208_v49, 15  ;;  %v205_v56 = vmul.u32 2146121005, %v189_v14 }
  0x63   :  { %v274_v18 = vmul.u32 2221713035, %v258_v48  ;;  %v206_v59 = vmul.u32 2146121005, %v190_v52  ;;  %v140_v60 = vadd.s32 %v1666_v23, %v1773_v53  ;;  %v1154_v0 = vshrl.u32 %v139_v1, 16  ;;  %v69_v52 = vld [vmem:[#allocation4 + $0x18] sm:$0xff] }
  0x64   :  { %v1192_v58 = vshrl.u32 %v273_v51, 16  ;;  %v255_v62 = vxor.u32 %v1174_v54, %v207_v30  ;;  %v256_v63 = vxor.u32 %v1175_v55, %v208_v49  ;;  %v1172_v3 = vshrl.u32 %v205_v56, 15 }
  0x65   :  { %v1193_v61 = vshrl.u32 %v274_v18, 16  ;;  %v1173_v5 = vshrl.u32 %v206_v59, 15  ;;  %v1155_v7 = vshrl.u32 %v140_v60, 16  ;;  %v187_v15 = vxor.u32 %v1154_v0, %v139_v1 }
  0x66   :  { %v321_v2 = vxor.u32 %v1192_v58, %v273_v51  ;;  %v271_v9 = vmul.u32 2221713035, %v255_v62  ;;  %v272_v11 = vmul.u32 2221713035, %v256_v63  ;;  %v253_v21 = vxor.u32 %v1172_v3, %v205_v56 }
  0x67   :  { %v322_v8 = vxor.u32 %v1193_v61, %v274_v18  ;;  %v254_v25 = vxor.u32 %v1173_v5, %v206_v59  ;;  %v188_v26 = vxor.u32 %v1155_v7, %v140_v60  ;;  %v203_v29 = vmul.u32 2146121005, %v187_v15 }
  0x68   :  { %v1208_v16 = vshrl.u32 %v321_v2, 9  ;;  %v1190_v28 = vshrl.u32 %v271_v9, 16  ;;  %v1191_v23 = vshrl.u32 %v272_v11, 16  ;;  %v269_v35 = vmul.u32 2221713035, %v253_v21  ;;  %v66_v21 = vld [vmem:[#allocation4] sm:$0xff] }
  0x69   :  { %v1209_v27 = vshrl.u32 %v322_v8, 9  ;;  %v270_v36 = vmul.u32 2221713035, %v254_v25  ;;  %v413_v37 = vmul.f32 2.0, %v68_v12  ;;  %v204_v42 = vmul.u32 2146121005, %v188_v26 }
  0x6a   :  { %v369_v34 = vcvt.s32.f32 %v1208_v16  ;;  %v319_v39 = vxor.u32 %v1190_v28, %v271_v9  ;;  %v320_v41 = vxor.u32 %v1191_v23, %v272_v11  ;;  %v1188_v46 = vshrl.u32 %v269_v35, 16  ;;  %v67_v25 = vld [vmem:[#allocation4 + $0x8] sm:$0xff] }
  0x6b   :  { %v370_v38 = vcvt.s32.f32 %v1209_v27  ;;  %v1189_v48 = vshrl.u32 %v270_v36, 16  ;;  %v1170_v30 = vshrl.u32 %v203_v29, 15  ;;  %v1171_v18 = vshrl.u32 %v204_v42, 15 }
  0x6c   :  { %v385_v45 = vmul.f32 1.1920929e-07, %v369_v34  ;;  %v1206_v51 = vshrl.u32 %v319_v39, 9  ;;  %v1207_v14 = vshrl.u32 %v320_v41, 9  ;;  %v317_v54 = vxor.u32 %v1188_v46, %v269_v35  ;;  %v1456_v39 = vld [vmem:[#allocation7 + $0x18] sm:$0xff]   ;;  %v1457_v41 = vld [vmem:[#allocation7 + $0x20] sm:$0xff]  }
  0x6d   :  { %v386_v49 = vmul.f32 1.1920929e-07, %v370_v38  ;;  %v318_v55 = vxor.u32 %v1189_v48, %v270_v36  ;;  %v251_v1 = vxor.u32 %v1170_v30, %v203_v29  ;;  %v252_v59 = vxor.u32 %v1171_v18, %v204_v42  ;;  %v1455_v38 = vld [vmem:[#allocation7 + $0x10] sm:$0xff]   ;;  %v1458_v42 = vld [vmem:[#allocation7 + $0x28] sm:$0xff]   ;;  %v1460_v46 = vld [vmem:[#allocation7 + $0x38] sm:$0xff]  }
  0x6e   :  { %vm401_vm12 = vcmp.ge.f32.partialorder %v385_v45, 0.5  ;;  %v367_v58 = vcvt.s32.f32 %v1206_v51  ;;  %v368_v56 = vcvt.s32.f32 %v1207_v14  ;;  %v1204_v60 = vshrl.u32 %v317_v54, 9  ;;  %v1459_v45 = vld [vmem:[#allocation7 + $0x30] sm:$0xff]   ;;  %v1461_v48 = vld [vmem:[#allocation9] sm:$0xff]  }
  0x6f   :  { %vm402_vm13 = vcmp.ge.f32.partialorder %v386_v49, 0.5  ;;  %v1205_v61 = vshrl.u32 %v318_v55, 9  ;;  %v414_v62 = vmul.f32 2.0, %v69_v52  ;;  %v267_v63 = vmul.u32 2221713035, %v251_v1  ;;  %1427 = vmatprep.mubr.bf16.mxu1 %v1461_v48 }
  0x70   :  { %vm1238_vm14 = vmpackc.low %vm402_vm13, %vm401_vm12  ;;  %v383_v0 = vmul.f32 1.1920929e-07, %v367_v58  ;;  %v384_v2 = vmul.f32 1.1920929e-07, %v368_v56  ;;  %v1242_v3 = vpack.c.bf16 %v1762_v31, %v1751_v17  ;;  %v268_v5 = vmul.u32 2221713035, %v252_v59 }
  0x71   :  { %1387 = vmatprep.subr.msk.bf16.mxu0 %vm1238_vm14, %v1753_v22  ;;  %v365_v7 = vcvt.s32.f32 %v1204_v60  ;;  %v366_v8 = vcvt.s32.f32 %v1205_v61  ;;  %v1186_v9 = vshrl.u32 %v267_v63, 16  ;;  %v1245_v16 = vpack.c.bf16 %v414_v62, %v413_v37  ;;  %v1454_v37 = vld [vmem:[#allocation7 + $0x8] sm:$0xff]  }
  0x72   :  { %1388 = vmatpush3.bf16.msk.msra.mxu0 %vm1238_vm14, %v1753_v22  ;;  %vm399_vm15 = vcmp.ge.f32.partialorder %v383_v0, 0.5  ;;  %vm400_vm0 = vcmp.ge.f32.partialorder %v384_v2, 0.5  ;;  %v1187_v11 = vshrl.u32 %v268_v5, 16  ;;  %v411_v31 = vmul.f32 2.0, %v66_v21 }
  0x73   :  { %vm1241_vm1 = vmpackc.low %vm400_vm0, %vm399_vm15  ;;  %v381_v12 = vmul.f32 1.1920929e-07, %v365_v7  ;;  %v382_v15 = vmul.f32 1.1920929e-07, %v366_v8  ;;  %v315_v26 = vxor.u32 %v1186_v9, %v267_v63  ;;  %v412_v28 = vmul.f32 2.0, %v67_v25 }
  0x74   :  { %1389 = vmatprep.subr.msk.bf16.mxu0 %vm1241_vm1, %v1242_v3  ;;  %v316_v27 = vxor.u32 %v1187_v11, %v268_v5  ;;  %v1783_v30 = vstv %s629_s14 }
  0x75   :  { %vm397_vm2 = vcmp.ge.f32.partialorder %v381_v12, 0.5  ;;  %vm398_vm3 = vcmp.ge.f32.partialorder %v382_v15, 0.5  ;;  %v1202_v17 = vshrl.u32 %v315_v26, 9  ;;  %v1248_v36 = vpack.c.bf16 %v412_v28, %v411_v31 }
  0x76   :  { %1390 = vmatpush3.bf16.msk.msra.mxu0 %vm1241_vm1, %v1242_v3  ;;  %vm1244_vm4 = vmpackc.low %vm398_vm3, %vm397_vm2  ;;  %v1203_v22 = vshrl.u32 %v316_v27, 9  ;;  %v645_v49 = vadd.s32 %v1783_v30, %v1661_v19  ;;  %v646_v51 = vadd.s32 %v1783_v30, %v1664_v20  ;;  %v643_v14 = vadd.s32 %v1783_v30, %v1675_v32 }
  0x77   :  { %1391 = vmatprep.subr.msk.bf16.mxu0 %vm1244_vm4, %v1245_v16  ;;  %v363_v23 = vcvt.s32.f32 %v1202_v17  ;;  %v644_v52 = vadd.s32 %v1783_v30, %v1678_v33  ;;  %v641_v55 = vadd.s32 %v1783_v30, %v1687_v43  ;;  %v642_v56 = vadd.s32 %v1783_v30, %v1690_v44 }
  0x78   :  { %v364_v29 = vcvt.s32.f32 %v1203_v22  ;;  %v1265_v18 = vshrl.u32 %v645_v49, 16  ;;  %v1266_v54 = vshrl.u32 %v646_v51, 16  ;;  %v1263_v1 = vshrl.u32 %v643_v14, 16 }
  0x79   :  { %v379_v34 = vmul.f32 1.1920929e-07, %v363_v23  ;;  %v1264_v58 = vshrl.u32 %v644_v52, 16  ;;  %v1261_v60 = vshrl.u32 %v641_v55, 16  ;;  %v1262_v62 = vshrl.u32 %v642_v56, 16 }
  0x7a   :  { %1392 = vmatpush3.bf16.msk.msra.mxu0 %vm1244_vm4, %v1245_v16  ;;  %v380_v35 = vmul.f32 1.1920929e-07, %v364_v29  ;;  %v693_v19 = vxor.u32 %v1265_v18, %v645_v49  ;;  %v694_v59 = vxor.u32 %v1266_v54, %v646_v51  ;;  %v691_v20 = vxor.u32 %v1263_v1, %v643_v14 }
  0x7b   :  { %vm395_vm5 = vcmp.ge.f32.partialorder %v379_v34, 0.5  ;;  %v692_v61 = vxor.u32 %v1264_v58, %v644_v52  ;;  %v639_v32 = vadd.s32 %v1783_v30, %v1701_v57  ;;  %v640_v33 = vadd.s32 %v1783_v30, %v1706_v10 }
  0x7c   :  { %vm396_vm6 = vcmp.ge.f32.partialorder %v380_v35, 0.5  ;;  %v709_v63 = vmul.u32 2146121005, %v693_v19  ;;  %v710_v0 = vmul.u32 2146121005, %v694_v59  ;;  %v689_v43 = vxor.u32 %v1261_v60, %v641_v55 }
  0x7d   :  { %vm1247_vm7 = vmpackc.low %vm396_vm6, %vm395_vm5  ;;  %v707_v2 = vmul.u32 2146121005, %v691_v20  ;;  %v708_v3 = vmul.u32 2146121005, %v692_v61  ;;  %v690_v5 = vxor.u32 %v1262_v62, %v642_v56  ;;  %v1259_v7 = vshrl.u32 %v639_v32, 16 }
  0x7e   :  { %1393 = vmatprep.subr.msk.bf16.mxu0 %vm1247_vm7, %v1248_v36  ;;  %v1260_v44 = vshrl.u32 %v640_v33, 16  ;;  %v637_v8 = vadd.s32 %v1783_v30, %v1722_v40  ;;  %v1281_v9 = vshrl.u32 %v709_v63, 15  ;;  %v1282_v11 = vshrl.u32 %v710_v0, 15 }
  0x7f   :  { %1394 = vmatpush3.bf16.msk.msra.mxu0 %vm1247_vm7, %v1248_v36  ;;  %v705_v12 = vmul.u32 2146121005, %v689_v43  ;;  %v638_v57 = vadd.s32 %v1783_v30, %v1726_v47  ;;  %v1279_v15 = vshrl.u32 %v707_v2, 15  ;;  %v1280_v16 = vshrl.u32 %v708_v3, 15 }
  0x80   :  { %v706_v10 = vmul.u32 2146121005, %v690_v5  ;;  %v687_v21 = vxor.u32 %v1259_v7, %v639_v32  ;;  %v688_v25 = vxor.u32 %v1260_v44, %v640_v33  ;;  %v1257_v26 = vshrl.u32 %v637_v8, 16 }
  0x81   :  { %v757_v27 = vxor.u32 %v1281_v9, %v709_v63  ;;  %v758_v17 = vxor.u32 %v1282_v11, %v710_v0  ;;  %v1277_v22 = vshrl.u32 %v705_v12, 15  ;;  %v1258_v31 = vshrl.u32 %v638_v57, 16 }
  0x82   :  { %1396 = vmatmul.mubr.bf16.vlgmr.msra.gmra.mxu0 %v1454_v37  ;;  %v635_v28 = vadd.s32 %v1783_v30, %v1741_v4  ;;  %v636_v40 = vadd.s32 %v1783_v30, %v1744_v6  ;;  %v1809_v23 = vxor.u32 %v1279_v15, %v707_v2  ;;  %v1811_v29 = vxor.u32 %v1280_v16, %v708_v3 }
  0x83   :  { %1399 = vmatprep.mubr.bf16.mxu0 %v1455_v38  ;;  %v1278_v47 = vshrl.u32 %v706_v10, 15  ;;  %v703_v34 = vmul.u32 2146121005, %v687_v21  ;;  %v704_v35 = vmul.u32 2146121005, %v688_v25  ;;  %v685_v36 = vxor.u32 %v1257_v26, %v637_v8 }
  0x84   :  { %v773_v37 = vmul.u32 2221713035, %v757_v27  ;;  %v774_v38 = vmul.u32 2221713035, %v758_v17  ;;  %v633_v4 = vadd.s32 %v1783_v30, %v1756_v13  ;;  %v634_v6 = vadd.s32 %v1783_v30, %v1759_v24 }
  0x85   :  { %v771_v48 = vmul.u32 2221713035, %v1809_v23  ;;  %v772_v49 = vmul.u32 2221713035, %v1811_v29  ;;  %v754_v14 = vxor.u32 %v1278_v47, %v706_v10  ;;  %v1275_v52 = vshrl.u32 %v703_v34, 15 }
  0x86   :  { %v1276_v18 = vshrl.u32 %v704_v35, 15  ;;  %v701_v54 = vmul.u32 2146121005, %v685_v36  ;;  %v1253_v56 = vshrl.u32 %v633_v4, 16  ;;  %v1254_v19 = vshrl.u32 %v634_v6, 16 }
  0x87   :  { %v1297_v59 = vshrl.u32 %v773_v37, 16  ;;  %v1298_v60 = vshrl.u32 %v774_v38, 16  ;;  %v631_v20 = vadd.s32 %v1783_v30, %v1770_v50  ;;  %v632_v61 = vadd.s32 %v1783_v30, %v1773_v53 }
  0x88   :  { %v770_v32 = vmul.u32 2221713035, %v754_v14  ;;  %v751_v33 = vxor.u32 %v1275_v52, %v703_v34  ;;  %v752_v63 = vxor.u32 %v1276_v18, %v704_v35  ;;  %v1273_v0 = vshrl.u32 %v701_v54, 15 }
  0x89   :  { %v1295_v43 = vshrl.u32 %v771_v48, 16  ;;  %v1296_v2 = vshrl.u32 %v772_v49, 16  ;;  %v681_v50 = vxor.u32 %v1253_v56, %v633_v4  ;;  %v682_v9 = vxor.u32 %v1254_v19, %v634_v6 }
  0x8a   :  { %1400 = vmatmul.mubr.bf16.gmra.mxu0 %v1456_v39  ;;  %v753_v39 = vxor.u32 %v1277_v22, %v705_v12  ;;  %v821_v53 = vxor.u32 %v1297_v59, %v773_v37  ;;  %v822_v30 = vxor.u32 %v1298_v60, %v774_v38  ;;  %v1251_v11 = vshrl.u32 %v631_v20, 16 }
  0x8b   :  { %1403 = vmatprep.mubr.bf16.mxu0 %v1457_v41  ;;  %v686_v41 = vxor.u32 %v1258_v31, %v638_v57  ;;  %v1252_v12 = vshrl.u32 %v632_v61, 16  ;;  %v1294_v15 = vshrl.u32 %v770_v32, 16  ;;  %v767_v16 = vmul.u32 2221713035, %v751_v33 }
  0x8c   :  { %v769_v55 = vmul.u32 2221713035, %v753_v39  ;;  %v768_v10 = vmul.u32 2221713035, %v752_v63  ;;  %v749_v21 = vxor.u32 %v1273_v0, %v701_v54  ;;  %v819_v25 = vxor.u32 %v1295_v43, %v771_v48 }
  0x8d   :  { %v702_v1 = vmul.u32 2146121005, %v686_v41  ;;  %v820_v26 = vxor.u32 %v1296_v2, %v772_v49  ;;  %v698_v23 = vmul.u32 2146121005, %v682_v9  ;;  %v1313_v29 = vshrl.u32 %v821_v53, 9 }
  0x8e   :  { %v1293_v3 = vshrl.u32 %v769_v55, 16  ;;  %v1314_v47 = vshrl.u32 %v822_v30, 9  ;;  %v679_v34 = vxor.u32 %v1251_v11, %v631_v20  ;;  %v680_v35 = vxor.u32 %v1252_v12, %v632_v61 }
  0x8f   :  { %v1274_v5 = vshrl.u32 %v702_v1, 15  ;;  %v818_v37 = vxor.u32 %v1294_v15, %v770_v32  ;;  %v1291_v38 = vshrl.u32 %v767_v16, 16  ;;  %v1292_v39 = vshrl.u32 %v768_v10, 16 }
  0x90   :  { %v817_v27 = vxor.u32 %v1293_v3, %v769_v55  ;;  %v765_v41 = vmul.u32 2221713035, %v749_v21  ;;  %v1270_v18 = vshrl.u32 %v698_v23, 15  ;;  %v869_v54 = vcvt.s32.f32 %v1313_v29 }
  0x91   :  { %v750_v17 = vxor.u32 %v1274_v5, %v702_v1  ;;  %v870_v55 = vcvt.s32.f32 %v1314_v47  ;;  %v695_v1 = vmul.u32 2146121005, %v679_v34  ;;  %v1310_v56 = vshrl.u32 %v818_v37, 9 }
  0x92   :  { %1404 = vmatmul.mubr.bf16.gmra.mxu0 %v1458_v42  ;;  %v1309_v4 = vshrl.u32 %v817_v27, 9  ;;  %v815_v19 = vxor.u32 %v1291_v38, %v767_v16  ;;  %v816_v59 = vxor.u32 %v1292_v39, %v768_v10  ;;  %v1289_v60 = vshrl.u32 %v765_v41, 16 }
  0x93   :  { %1407 = vmatprep.mubr.bf16.mxu0 %v1459_v45  ;;  %v1255_v45 = vshrl.u32 %v635_v28, 16  ;;  %v766_v6 = vmul.u32 2221713035, %v750_v17  ;;  %v746_v3 = vxor.u32 %v1270_v18, %v698_v23  ;;  %v885_v5 = vmul.f32 1.1920929e-07, %v869_v54  ;;  %v1468_v18 = vld [vmem:[#allocation9 + $0x38] sm:$0xff]  }
  0x94   :  { %v865_v32 = vcvt.s32.f32 %v1309_v4  ;;  %v866_v53 = vcvt.s32.f32 %v1310_v56  ;;  %v1307_v30 = vshrl.u32 %v815_v19, 9  ;;  %v1308_v11 = vshrl.u32 %v816_v59, 9 }
  0x95   :  { %v683_v58 = vxor.u32 %v1255_v45, %v635_v28  ;;  %v1311_v45 = vshrl.u32 %v819_v25, 9  ;;  %v1290_v33 = vshrl.u32 %v766_v6, 16  ;;  %v813_v12 = vxor.u32 %v1289_v60, %v765_v41 }
  0x96   :  { %v881_v10 = vmul.f32 1.1920929e-07, %v865_v32  ;;  %vm901_vm8 = vcmp.ge.f32.partialorder %v885_v5, 0.5  ;;  %v882_v29 = vmul.f32 1.1920929e-07, %v866_v53  ;;  %v863_v47 = vcvt.s32.f32 %v1307_v30 }
  0x97   :  { %v699_v44 = vmul.u32 2146121005, %v683_v58  ;;  %v696_v58 = vmul.u32 2146121005, %v680_v35  ;;  %v867_v20 = vcvt.s32.f32 %v1311_v45  ;;  %v814_v21 = vxor.u32 %v1290_v33, %v766_v6 }
  0x98   :  { %v864_v34 = vcvt.s32.f32 %v1308_v11  ;;  %v1305_v35 = vshrl.u32 %v813_v12, 9  ;;  %vm897_vm12 = vcmp.ge.f32.partialorder %v881_v10, 0.5  ;;  %vm898_vm14 = vcmp.ge.f32.partialorder %v882_v29, 0.5 }
  0x99   :  { %v1271_v31 = vshrl.u32 %v699_v44, 15  ;;  %v883_v15 = vmul.f32 1.1920929e-07, %v867_v20  ;;  %v1306_v37 = vshrl.u32 %v814_v21, 9  ;;  %v879_v54 = vmul.f32 1.1920929e-07, %v863_v47  ;;  %vm1881_vm2 = vmpackc.low %vm898_vm14, %vm897_vm12 }
  0x9a   :  { %1408 = vmatmul.mubr.bf16.gmra.mxu0 %v1460_v46  ;;  %v1256_v46 = vshrl.u32 %v636_v40, 16 }
  0x9b   :  { %v747_v49 = vxor.u32 %v1271_v31, %v699_v44  ;;  %v886_v44 = vmul.f32 1.1920929e-07, %v870_v55  ;;  %v762_v31 = vmul.u32 2221713035, %v746_v3  ;;  %vm899_vm10 = vcmp.ge.f32.partialorder %v883_v15, 0.5 }
  0x9c   :  { %v684_v24 = vxor.u32 %v1256_v46, %v636_v40  ;;  %v697_v40 = vmul.u32 2146121005, %v681_v50  ;;  %v1312_v46 = vshrl.u32 %v820_v26, 9  ;;  %v1268_v50 = vshrl.u32 %v696_v58, 15 }
  0x9d   :  { %v763_v0 = vmul.u32 2221713035, %v747_v49  ;;  %vm902_vm9 = vcmp.ge.f32.partialorder %v886_v44, 0.5  ;;  %v880_v55 = vmul.f32 1.1920929e-07, %v864_v34  ;;  %v862_v59 = vcvt.s32.f32 %v1306_v37 }
  0x9e   :  { %v700_v8 = vmul.u32 2146121005, %v684_v24  ;;  %v1269_v52 = vshrl.u32 %v697_v40, 15  ;;  %v868_v61 = vcvt.s32.f32 %v1312_v46  ;;  %v1286_v46 = vshrl.u32 %v762_v31, 16  ;;  %vm1861_vm13 = vmpackc.low %vm902_vm9, %vm901_vm8 }
  0x9f   :  { %v1287_v26 = vshrl.u32 %v763_v0, 16  ;;  %vm895_vm0 = vcmp.ge.f32.partialorder %v879_v54, 0.5  ;;  %vm896_vm1 = vcmp.ge.f32.partialorder %v880_v55, 0.5 }
  0xa0   :  { %v1272_v28 = vshrl.u32 %v700_v8, 15  ;;  %v745_v2 = vxor.u32 %v1269_v52, %v697_v40  ;;  %v884_v16 = vmul.f32 1.1920929e-07, %v868_v61  ;;  %v744_v40 = vxor.u32 %v1268_v50, %v696_v58  ;;  %vm1893_vm5 = vmpackc.low %vm896_vm1, %vm895_vm0 }
  0xa1   :  { %v811_v39 = vxor.u32 %v1287_v26, %v763_v0  ;;  %v810_v33 = vxor.u32 %v1286_v46, %v762_v31 }
  0xa2   :  { %v748_v14 = vxor.u32 %v1272_v28, %v700_v8  ;;  %v1267_v8 = vshrl.u32 %v695_v1, 15  ;;  %v761_v17 = vmul.u32 2221713035, %v745_v2  ;;  %vm900_vm11 = vcmp.ge.f32.partialorder %v884_v16, 0.5 }
  0xa3   :  { %vm1867_vm15 = vmpackc.low %vm900_vm11, %vm899_vm10  ;;  %v1303_v20 = vshrl.u32 %v811_v39, 9  ;;  %v1302_v11 = vshrl.u32 %v810_v33, 9 }
  0xa4   :  { %v764_v43 = vmul.u32 2221713035, %v748_v14  ;;  %v743_v28 = vxor.u32 %v1267_v8, %v695_v1  ;;  %v1285_v45 = vshrl.u32 %v761_v17, 16  ;;  %v760_v14 = vmul.u32 2221713035, %v744_v40 }
  0xa5   :  { %v861_v1 = vcvt.s32.f32 %v1305_v35  ;;  %v878_v8 = vmul.f32 1.1920929e-07, %v862_v59  ;;  %v859_v50 = vcvt.s32.f32 %v1303_v20 }
  0xa6   :  { %v1288_v27 = vshrl.u32 %v764_v43, 16  ;;  %v759_v49 = vmul.u32 2221713035, %v743_v28  ;;  %v809_v32 = vxor.u32 %v1285_v45, %v761_v17  ;;  %v1284_v3 = vshrl.u32 %v760_v14, 16 }
  0xa7   :  { %v877_v44 = vmul.f32 1.1920929e-07, %v861_v1  ;;  %vm894_vm4 = vcmp.ge.f32.partialorder %v878_v8, 0.5 }
  0xa8   :  { %v812_v41 = vxor.u32 %v1288_v27, %v764_v43  ;;  %v1283_v2 = vshrl.u32 %v759_v49, 16  ;;  %v1301_v30 = vshrl.u32 %v809_v32, 9  ;;  %v808_v16 = vxor.u32 %v1284_v3, %v760_v14  ;;  %v1465_v14 = vld [vmem:[#allocation9 + $0x20] sm:$0xff]  }
  0xa9   :  { %vm893_vm3 = vcmp.ge.f32.partialorder %v877_v44, 0.5  ;;  %v858_v27 = vcvt.s32.f32 %v1302_v11 }
  0xaa   :  { %v1304_v61 = vshrl.u32 %v812_v41, 9  ;;  %v857_v26 = vcvt.s32.f32 %v1301_v30  ;;  %vm1903_vm6 = vmpackc.low %vm894_vm4, %vm893_vm3 }
  0xab   :  { %v874_v47 = vmul.f32 1.1920929e-07, %v858_v27 }
  0xac   :  { %v860_v53 = vcvt.s32.f32 %v1304_v61  ;;  %v873_v29 = vmul.f32 1.1920929e-07, %v857_v26 }
  0xad   :  { %vm890_vm11 = vcmp.ge.f32.partialorder %v874_v47, 0.5 }
  0xae   :  { %vm889_vm10 = vcmp.ge.f32.partialorder %v873_v29, 0.5 }
  0xaf   :  { %vm1341_vm12 = vmpackc.low %vm890_vm11, %vm889_vm10 }
 0x142   :  { %v1813_v42 = vpop.f32.mrf.mxu0 }
 0x143   :  { %614 = vst [vmem:[#allocation10 + $0x10] sm:$0xff] %v1813_v42 }
 0x144   :  { %v1822_v51 = vpop.f32.mrf.mxu0 }
 0x145   :  { %612 = vst [vmem:[#allocation10] sm:$0xff] %v1822_v51 }
 0x146   :  { %v1825_v13 = vpop.f32.mrf.mxu0 }
 0x147   :  { %615 = vst [vmem:[#allocation10 + $0x18] sm:$0xff] %v1825_v13 }
 0x148   :  { %v1832_v62 = vpop.f32.mrf.mxu0 }
 0x149   :  { %613 = vst [vmem:[#allocation10 + $0x8] sm:$0xff] %v1832_v62 }
 0x14a   :  { %v1835_v7 = vpop.f32.mrf.mxu0 }
 0x14b   :  { %618 = vst [vmem:[#allocation10 + $0x30] sm:$0xff] %v1835_v7  ;;  %v909_v40 = vmul.f32 2.0, %v1835_v7 }
 0x14c   :  { %v1838_v57 = vpop.f32.mrf.mxu0 }
 0x14d   :  { %616 = vst [vmem:[#allocation10 + $0x20] sm:$0xff] %v1838_v57  ;;  %v907_v7 = vmul.f32 2.0, %v1838_v57  ;;  %v904_v57 = vmul.f32 2.0, %v1832_v62  ;;  %v1466_v62 = vld [vmem:[#allocation9 + $0x28] sm:$0xff]  }
 0x14e   :  { %v1841_v22 = vpop.f32.mrf.mxu0 }
 0x14f   :  { %619 = vst [vmem:[#allocation10 + $0x38] sm:$0xff] %v1841_v22  ;;  %v910_v17 = vmul.f32 2.0, %v1841_v22 }
 0x150   :  { %v1844_v36 = vpop.f32.mrf.mxu0 }
 0x151   :  { %617 = vst [vmem:[#allocation10 + $0x28] sm:$0xff] %v1844_v36  ;;  %v1336_v22 = vpack.c.bf16 %v910_v17, %v909_v40  ;;  %v908_v34 = vmul.f32 2.0, %v1844_v36  ;;  %v905_v36 = vmul.f32 2.0, %v1813_v42  ;;  %v1464_v42 = vld [vmem:[#allocation9 + $0x18] sm:$0xff]  }
 0x152   :  { %v1847_v48 = vpop.f32.mrf.mxu0 }
 0x153   :  { %622 = vst [vmem:[#allocation10 + $0x50] sm:$0xff] %v1847_v48  ;;  %v913_v5 = vmul.f32 2.0, %v1847_v48  ;;  %v807_v48 = vxor.u32 %v1283_v2, %v759_v49  ;;  %v1339_v39 = vpack.c.bf16 %v908_v34, %v907_v7  ;;  %v1463_v49 = vld [vmem:[#allocation9 + $0x10] sm:$0xff]  }
 0x154   :  { %v1850_v24 = vpop.f32.mrf.mxu0 }
 0x155   :  { %620 = vst [vmem:[#allocation10 + $0x40] sm:$0xff] %v1850_v24  ;;  %v911_v21 = vmul.f32 2.0, %v1850_v24  ;;  %v1299_v28 = vshrl.u32 %v807_v48, 9  ;;  %v1300_v24 = vshrl.u32 %v808_v16, 9 }
 0x156   :  { %v1853_v63 = vpop.f32.mrf.mxu0 }
 0x157   :  { %623 = vst [vmem:[#allocation10 + $0x58] sm:$0xff] %v1853_v63  ;;  %v914_v0 = vmul.f32 2.0, %v1853_v63  ;;  %v855_v35 = vcvt.s32.f32 %v1299_v28  ;;  %v856_v37 = vcvt.s32.f32 %v1300_v24 }
 0x158   :  { %v1856_v9 = vpop.f32.mrf.mxu0 }
 0x159   :  { %621 = vst [vmem:[#allocation10 + $0x48] sm:$0xff] %v1856_v9  ;;  %v1330_v12 = vpack.c.bf16 %v914_v0, %v913_v5  ;;  %v912_v15 = vmul.f32 2.0, %v1856_v9  ;;  %v876_v9 = vmul.f32 1.1920929e-07, %v860_v53  ;;  %v871_v41 = vmul.f32 1.1920929e-07, %v855_v35 }
 0x15a   :  { %v1409_v25 = vpop.f32.mrf.mxu0  ;;  %v872_v45 = vmul.f32 1.1920929e-07, %v856_v37 }
 0x15b   :  { %626 = vst [vmem:[#allocation10 + $0x70] sm:$0xff] %v1409_v25  ;;  %v917_v4 = vmul.f32 2.0, %v1409_v25  ;;  %v875_v25 = vmul.f32 1.1920929e-07, %v859_v50  ;;  %v1333_v31 = vpack.c.bf16 %v912_v15, %v911_v21  ;;  %vm892_vm8 = vcmp.ge.f32.partialorder %v876_v9, 0.5 }
 0x15c   :  { %v597_v23 = vpop.f32.mrf.mxu0  ;;  %vm888_vm14 = vcmp.ge.f32.partialorder %v872_v45, 0.5 }
 0x15d   :  { %624 = vst [vmem:[#allocation10 + $0x60] sm:$0xff] %v597_v23  ;;  %v915_v58 = vmul.f32 2.0, %v597_v23  ;;  %vm891_vm7 = vcmp.ge.f32.partialorder %v875_v25, 0.5 }
 0x15e   :  { %v1410_v38 = vpop.f32.mrf.mxu0  ;;  %vm1338_vm9 = vmpackc.low %vm892_vm8, %vm891_vm7 }
 0x15f   :  { %627 = vst [vmem:[#allocation10 + $0x78] sm:$0xff] %v1410_v38  ;;  %v918_v6 = vmul.f32 2.0, %v1410_v38  ;;  %v906_v38 = vmul.f32 2.0, %v1825_v13 }
 0x160   :  { %v600_v52 = vpop.f32.mrf.mxu0 }
 0x161   :  { %625 = vst [vmem:[#allocation10 + $0x68] sm:$0xff] %v600_v52  ;;  %v916_v56 = vmul.f32 2.0, %v600_v52  ;;  %v1324_v19 = vpack.c.bf16 %v918_v6, %v917_v4  ;;  %v1342_v46 = vpack.c.bf16 %v906_v38, %v905_v36  ;;  %v903_v4 = vmul.f32 2.0, %v1822_v51  ;;  %v1462_v6 = vld [vmem:[#allocation9 + $0x8] sm:$0xff]   ;;  %v1467_v52 = vld [vmem:[#allocation9 + $0x30] sm:$0xff]  }
 0x163   :  { %v1327_v43 = vpack.c.bf16 %v916_v56, %v915_v58  ;;  %1411 = vmatprep.subr.msk.bf16.mxu1 %vm1861_vm13, %v1324_v19  ;;  %v1345_v13 = vpack.c.bf16 %v904_v57, %v903_v4 }
 0x164   :  { %1412 = vmatpush3.bf16.msk.msra.mxu1 %vm1861_vm13, %v1324_v19  ;;  %vm887_vm13 = vcmp.ge.f32.partialorder %v871_v41, 0.5 }
 0x165   :  { %1413 = vmatprep.subr.msk.bf16.mxu1 %vm1867_vm15, %v1327_v43 }
 0x168   :  { %1414 = vmatpush3.bf16.msk.msra.mxu1 %vm1867_vm15, %v1327_v43  ;;  %vm1344_vm15 = vmpackc.low %vm888_vm14, %vm887_vm13 }
 0x169   :  { %1415 = vmatprep.subr.msk.bf16.mxu1 %vm1881_vm2, %v1330_v12 }
 0x16c   :  { %1416 = vmatpush3.bf16.msk.msra.mxu1 %vm1881_vm2, %v1330_v12 }
 0x16d   :  { %1417 = vmatprep.subr.msk.bf16.mxu1 %vm1893_vm5, %v1333_v31 }
 0x170   :  { %1418 = vmatpush3.bf16.msk.msra.mxu1 %vm1893_vm5, %v1333_v31 }
 0x171   :  { %1419 = vmatprep.subr.msk.bf16.mxu1 %vm1903_vm6, %v1336_v22 }
 0x174   :  { %1420 = vmatpush3.bf16.msk.msra.mxu1 %vm1903_vm6, %v1336_v22 }
 0x175   :  { %1421 = vmatprep.subr.msk.bf16.mxu1 %vm1338_vm9, %v1339_v39 }
 0x178   :  { %1422 = vmatpush3.bf16.msk.msra.mxu1 %vm1338_vm9, %v1339_v39 }
 0x179   :  { %1423 = vmatprep.subr.msk.bf16.mxu1 %vm1341_vm12, %v1342_v46 }
 0x17c   :  { %1424 = vmatpush3.bf16.msk.msra.mxu1 %vm1341_vm12, %v1342_v46 }
 0x17d   :  { %1425 = vmatprep.subr.msk.bf16.mxu1 %vm1344_vm15, %v1345_v13 }
 0x180   :  { %1426 = vmatpush3.bf16.msk.msra.mxu1 %vm1344_vm15, %v1345_v13 }
 0x183   :  { %1428 = vmatmul.mubr.bf16.vlgmr.msra.gmra.mxu1 %v1462_v6 }
 0x184   :  { %1431 = vmatprep.mubr.bf16.mxu1 %v1463_v49 }
 0x18b   :  { %1432 = vmatmul.mubr.bf16.gmra.mxu1 %v1464_v42 }
 0x18c   :  { %1435 = vmatprep.mubr.bf16.mxu1 %v1465_v14 }
 0x193   :  { %1436 = vmatmul.mubr.bf16.gmra.mxu1 %v1466_v62 }
 0x194   :  { %1439 = vmatprep.mubr.bf16.mxu1 %v1467_v52 }
 0x19b   :  { %1440 = vmatmul.mubr.bf16.gmra.mxu1 %v1468_v18 }
 0x19c   :  { %1548 = shalt.err (!%p1545_p5)
}
 0x19d   :  { %1131 = dma.vmem_to_hbm [thread:$0]  %s1126_s16, 2048, %s1935_s4, [#allocation6], %s1592_s30, %s1592_s30, %s1593_s6  }
 0x19e   :  { %s1596_s4 = smov [#allocation11]  }
 0x19f   :  { %s1137_s20 = sshll.u32 %s1596_s4, 4  ;;  %s1138_s20 = int_to_ptr.vmem [resolvable:$true] %s1137_s20 }
 0x1a0   :  { %s1557_s21 = scalar_lea.vmem %s1138_s20, 2048  ;;  %p1562_p7 = scmp.lt.s32.totalorder %s1138_s20, %s1138_s20 }
 0x1a1   :  { %p1558_p6 = scmp.ne.s32.totalorder %s1138_s20, %s1557_s21  ;;  %p1563_p8 = scmp.lt.s32.totalorder %s1557_s21, %s1557_s21 }
 0x1a3   :  { %p1564_p9 = por %p1563_p8, %p1562_p7 }
 0x1a5   :  { %p1565_p10 = pnand %p1564_p9, %p1558_p6 }
 0x243   :  { %v1429_v51 = vpop.f32.mrf.mxu1 }
 0x244   :  { %1106 = vst [vmem:[#allocation11 + $0x10] sm:$0xff] %v1429_v51 }
 0x245   :  { %v1041_v54 = vpop.f32.mrf.mxu1 }
 0x246   :  { %1104 = vst [vmem:[#allocation11] sm:$0xff] %v1041_v54 }
 0x247   :  { %v1430_v55 = vpop.f32.mrf.mxu1 }
 0x248   :  { %1107 = vst [vmem:[#allocation11 + $0x18] sm:$0xff] %v1430_v55 }
 0x249   :  { %v1044_v1 = vpop.f32.mrf.mxu1 }
 0x24a   :  { %1105 = vst [vmem:[#allocation11 + $0x8] sm:$0xff] %v1044_v1 }
 0x24b   :  { %v1433_v58 = vpop.f32.mrf.mxu1 }
 0x24c   :  { %1110 = vst [vmem:[#allocation11 + $0x30] sm:$0xff] %v1433_v58 }
 0x24d   :  { %v1057_v56 = vpop.f32.mrf.mxu1 }
 0x24e   :  { %1108 = vst [vmem:[#allocation11 + $0x20] sm:$0xff] %v1057_v56 }
 0x24f   :  { %v1434_v19 = vpop.f32.mrf.mxu1 }
 0x250   :  { %1111 = vst [vmem:[#allocation11 + $0x38] sm:$0xff] %v1434_v19 }
 0x251   :  { %v1060_v59 = vpop.f32.mrf.mxu1 }
 0x252   :  { %1109 = vst [vmem:[#allocation11 + $0x28] sm:$0xff] %v1060_v59 }
 0x253   :  { %v1437_v60 = vpop.f32.mrf.mxu1 }
 0x254   :  { %1114 = vst [vmem:[#allocation11 + $0x50] sm:$0xff] %v1437_v60 }
 0x255   :  { %v1073_v20 = vpop.f32.mrf.mxu1 }
 0x256   :  { %1112 = vst [vmem:[#allocation11 + $0x40] sm:$0xff] %v1073_v20 }
 0x257   :  { %v1438_v61 = vpop.f32.mrf.mxu1 }
 0x258   :  { %1115 = vst [vmem:[#allocation11 + $0x58] sm:$0xff] %v1438_v61 }
 0x259   :  { %v1076_v32 = vpop.f32.mrf.mxu1 }
 0x25a   :  { %1113 = vst [vmem:[#allocation11 + $0x48] sm:$0xff] %v1076_v32 }
 0x25b   :  { %v1441_v33 = vpop.f32.mrf.mxu1 }
 0x25c   :  { %1118 = vst [vmem:[#allocation11 + $0x70] sm:$0xff] %v1441_v33 }
 0x25d   :  { %v1089_v0 = vpop.f32.mrf.mxu1 }
 0x25e   :  { %1116 = vst [vmem:[#allocation11 + $0x60] sm:$0xff] %v1089_v0 }
 0x25f   :  { %v1442_v43 = vpop.f32.mrf.mxu1 }
 0x260   :  { %1119 = vst [vmem:[#allocation11 + $0x78] sm:$0xff] %v1442_v43 }
 0x261   :  { %v1092_v2 = vpop.f32.mrf.mxu1 }
 0x262   :  { %1117 = vst [vmem:[#allocation11 + $0x68] sm:$0xff] %v1092_v2 }
 0x263   :  { %1568 = shalt.err (!%p1565_p10)
}
 0x264   :  { %1143 = dma.vmem_to_hbm [thread:$0]  %s1138_s20, 2048, %s1936_s5, [#allocation12], %s1592_s30, %s1592_s30, %s1593_s6  }
 0x265   :  { %1583 = dma.done.wait [#allocation6], 2048  }
 0x266   :  { %1584 = vsyncadd [#allocation6], 4294965248 }
 0x267   :  { %1585 = dma.done.wait [#allocation12], 2048  }
 0x268   :  { %1586 = vsyncadd [#allocation12], 4294965248 }
 0x269   :  { %1150 = vsyncpa [#allocation5], 1 }
 0x26a   :  { %1151 = vsyncpa [#allocation8], 1 }
 0x26b   :  { %1152 = vsyncpa [#allocation6], 1 }
 0x26c   :  { %1153 = vsyncpa [#allocation12], 1 }

</bundles_post_ra>
